<compile_context>
chip_gen: v6e
topology: v6e:2x2x1
jax: 0.10.0
libtpu: 0.0.40
codegen_flags: <defaults>
</compile_context>

<pallas_src>
import jax
import jax.numpy as jnp
from jax import lax
from jax.experimental import pallas as pl
from jax.experimental.pallas import tpu as pltpu

HIDDEN = 64          # LSTM hidden size (per direction)
NUM_CLASSES = 4      # clf output size
CPAD = 128           # lane-padded classifier output width


def bilstm_clf_kernel(gih_ref,     # (T, Bpad, 8H) f32: fused embed + W_ih + bias, packed
                                   #   per-gate [I|F|O|G] x [fwd|bwd]; fwd half at time t,
                                   #   bwd half at time T-1-t; sigmoid cols pre-scaled by 0.5
                      whh_ref,     # (2H, 8H) f32: block-diagonal packed recurrent weights
                      wclf_ref,    # (2H, CPAD) f32: classifier weight, zero-padded past 4
                      bclf_ref,    # (1, CPAD)  f32
                      out_ref):    # (T, CPAD)  f32
    H = HIDDEN
    T, Bpad, _ = gih_ref.shape

    def cell(g_pre, h, c):
        # One MXU matmul advances BOTH directions (block-diagonal recurrent weight); whh is
        # read from VMEM inside the dot each step instead of living in vregs across the loop.
        gates = g_pre + jnp.dot(h, whh_ref[...], preferred_element_type=jnp.float32)
        t_all = jnp.tanh(gates)                           # only EUP op on the gates (4 vregs)
        i = 0.5 * t_all[:, 0 * 2 * H:1 * 2 * H] + 0.5     # sigmoid via pre-halved columns
        f = 0.5 * t_all[:, 1 * 2 * H:2 * 2 * H] + 0.5
        o = 0.5 * t_all[:, 2 * 2 * H:3 * 2 * H] + 0.5
        g = t_all[:, 3 * 2 * H:4 * 2 * H]
        c_new = f * c + i * g
        h_new = o * jnp.tanh(c_new)
        return h_new, c_new

    h = jnp.zeros((Bpad, 2 * H), jnp.float32)   # [h_fwd | h_bwd]; PyTorch zero initial state
    c = jnp.zeros((Bpad, 2 * H), jnp.float32)
    rows = []                                   # per-step batch-max rows, kept in registers
    # T is small & static here -> full unroll with static tile-aligned gih_ref[t] slices.
    # TODO(synk): for large T, switch to a time-chunked grid (persistent h/c scratch) so gih
    # streams through VMEM instead of being wholly resident (v7x VMEM budget).
    for t in range(T):
        h, c = cell(gih_ref[t], h, c)
        rows.append(jnp.max(h, axis=0, keepdims=True))    # (1, 2H) = [fwd(t) | bwd(T-1-t)]

    # Assemble the lane-dense pooled block once. The fwd half is already time-ordered; the
    # bwd half was produced in reversed time, so take it from the reversed Python list (free).
    fwd_order = jnp.concatenate(rows, axis=0)             # row t = [fwd(t)     | bwd(T-1-t)]
    rev_order = jnp.concatenate(rows[::-1], axis=0)       # row t = [fwd(T-1-t) | bwd(t)    ]
    col = lax.broadcasted_iota(jnp.int32, (T, 2 * H), 1)
    pooled = jnp.where(col < H, fwd_order, rev_order)     # row t = [fwd(t) | bwd(t)]

    # Classifier: one lane-dense matmul, lane-padded output (sliced to 4 in the wrapper).
    out_ref[...] = (jnp.dot(pooled, wclf_ref[...], preferred_element_type=jnp.float32)
                    + bclf_ref[...])


def pack_params(embeddings, pt):
    """Fold PyTorch-layout weights (and the frozen embedding table) into the kernel layout."""
    H = HIDDEN
    hp = lax.Precision.HIGHEST
    order = (0, 1, 3, 2)              # PyTorch gate order [i, f, g, o] -> packed [i, f, o, g]
    is_sigmoid = (True, True, True, False)

    def gate(w, k):                   # slice gate k rows of a PyTorch (4H, ...) parameter
        return w[k * H:(k + 1) * H]

    bsum_f = pt["b_ih_f"] + pt["b_hh_f"]
    bsum_b = pt["b_ih_b"] + pt["b_hh_b"]

    w_blocks, b_blocks, r_blocks = [], [], []
    for k, sig in zip(order, is_sigmoid):
        s = 0.5 if sig else 1.0       # sigmoid(z) = 0.5*(1 + tanh(z/2)) -> pre-halve inputs
        w_blocks.append(s * jnp.concatenate(
            [gate(pt["w_ih_f"], k).T, gate(pt["w_ih_b"], k).T], axis=1))        # (E, 2H)
        b_blocks.append(s * jnp.concatenate(
            [gate(bsum_f, k), gate(bsum_b, k)], axis=0))                        # (2H,)
        blk = jnp.zeros((2 * H, 2 * H), jnp.float32)
        blk = blk.at[0:H, 0:H].set(gate(pt["w_hh_f"], k).T)                     # fwd block
        blk = blk.at[H:2 * H, H:2 * H].set(gate(pt["w_hh_b"], k).T)             # bwd block
        r_blocks.append(s * blk)                                                # (2H, 2H)

    w8 = jnp.concatenate(w_blocks, axis=1)                # (E, 8H)
    b8 = jnp.concatenate(b_blocks, axis=0)[None, :]       # (1, 8H)
    whh = jnp.concatenate(r_blocks, axis=1)               # (2H, 8H) block-diagonal per gate

    # Fold the frozen embedding table into the input projection: one (vocab, 8H) table.
    proj_table = jnp.dot(embeddings.astype(jnp.float32), w8, precision=hp) + b8

    wclf = jnp.zeros((2 * H, CPAD), jnp.float32).at[:, :NUM_CLASSES].set(pt["w_clf"].T)
    bclf = jnp.zeros((1, CPAD), jnp.float32).at[0, :NUM_CLASSES].set(pt["b_clf"])
    return {"proj_table": proj_table, "whh": whh, "wclf": wclf, "bclf": bclf}


def experimental_network_forward(x, packed):
    # Embedding lookup (padding_idx only masks gradients in PyTorch, so forward is a plain
    # lookup) is fused with the input projection: gather rows of the (vocab, 8H) table.
    T, B = x.shape
    Bpad = max(8, ((B + 7) // 8) * 8)
    # Pad the batch axis to a sublane multiple by REPLICATING the last real column; duplicate
    # columns evolve identically, so the max over the batch is unchanged (no in-kernel mask).
    x_pad = jnp.pad(x, ((0, 0), (0, Bpad - B)), mode="edge")
    proj = packed["proj_table"][x_pad]                    # (T, Bpad, 8H) f32, XLA gather glue
    # Pair fwd(t) with bwd(T-1-t) so one packed cell advances both chains per step:
    col = jnp.arange(8 * HIDDEN)
    is_bwd = ((col // HIDDEN) % 2) == 1                   # odd 64-blocks are the bwd direction
    gih = jnp.where(is_bwd, proj[::-1], proj)             # (T, Bpad, 8H)

    # VMEM footprint is tiny at these sizes (gih 16KB*T + whh 256KB + wclf 64KB), well inside
    # the default scoped limit on every generation, so no vmem_limit override is needed.
    vmem = pl.BlockSpec(memory_space=pltpu.MemorySpace.VMEM)
    out = pl.pallas_call(
        bilstm_clf_kernel,
        out_shape=jax.ShapeDtypeStruct((T, CPAD), jnp.float32),
        in_specs=[vmem] * 4,
        out_specs=vmem,
    )(gih, packed["whh"], packed["wclf"], packed["bclf"])
    return out[:, :NUM_CLASSES]


# ---------------- pure-JAX reference (PyTorch semantics, for correctness check) ----------------
def _reference(emb, pt):
    hp = lax.Precision.HIGHEST
    H = HIDDEN
    T, B, E = emb.shape

    def run(wih, whh, bih, bhh, xs):
        def step(carry, x_t):
            h, c = carry
            gates = (jnp.dot(x_t, wih.T, precision=hp) + bih
                     + jnp.dot(h, whh.T, precision=hp) + bhh)
            i = jax.nn.sigmoid(gates[:, 0:H])
            f = jax.nn.sigmoid(gates[:, H:2 * H])
            g = jnp.tanh(gates[:, 2 * H:3 * H])
            o = jax.nn.sigmoid(gates[:, 3 * H:4 * H])
            c = f * c + i * g
            h = o * jnp.tanh(c)
            return (h, c), h
        h0 = jnp.zeros((B, H), jnp.float32)
        _, seq = lax.scan(step, (h0, h0), xs)
        return seq

    seq_f = run(pt["w_ih_f"], pt["w_hh_f"], pt["b_ih_f"], pt["b_hh_f"], emb)
    seq_b = run(pt["w_ih_b"], pt["w_hh_b"], pt["b_ih_b"], pt["b_hh_b"], emb[::-1])[::-1]
    out = jnp.concatenate([seq_f, seq_b], axis=-1)   # (T, B, 2H)
    pooled = jnp.max(out, axis=1)                    # (T, 2H)
    return jnp.dot(pooled, pt["w_clf"].T, precision=hp) + pt["b_clf"]


if __name__ == "__main__":
    key = jax.random.PRNGKey(0)
    ks = jax.random.split(key, 12)

    vocab, E = 20, 32          # embeddings.shape
    D0, D1 = 8, 2              # x shape (D0 = time, D1 = batch per module semantics)
    H = HIDDEN

    embeddings = jax.random.normal(ks[0], (vocab, E), jnp.float32) * 0.5
    x = jax.random.randint(ks[1], (D0, D1), 0, vocab, dtype=jnp.int32)

    def mk(k, shape, scale=0.1):
        return jax.random.normal(k, shape, jnp.float32) * scale

    # PyTorch-layout parameters (gate order i, f, g, o).
    torch_params = {
        "w_ih_f": mk(ks[2], (4 * H, E)),
        "w_hh_f": mk(ks[3], (4 * H, H)),
        "b_ih_f": mk(ks[4], (4 * H,)),
        "b_hh_f": mk(ks[5], (4 * H,)),
        "w_ih_b": mk(ks[6], (4 * H, E)),
        "w_hh_b": mk(ks[7], (4 * H, H)),
        "b_ih_b": mk(ks[8], (4 * H,)),
        "b_hh_b": mk(ks[9], (4 * H,)),
        "w_clf": mk(ks[10], (NUM_CLASSES, 2 * H)),
        "b_clf": mk(ks[11], (NUM_CLASSES,)),
    }

    packed = pack_params(embeddings, torch_params)
    out = experimental_network_forward(x, packed)
    out = jax.block_until_ready(out)
    assert out.shape == (D0, NUM_CLASSES), out.shape

    ref = _reference(embeddings[x].astype(jnp.float32), torch_params)
    err = jnp.max(jnp.abs(out - ref))
    assert jnp.allclose(out, ref, atol=2e-3, rtol=2e-3), f"max abs err {err}"

    print("KERNEL_OK")
</pallas_src>

<mosaic_0001>
module attributes {stable_mosaic.version = 11 : i64} {
  func.func @bilstm_clf_kernel(%arg0: memref<8x8x512xf32, #tpu.memory_space<vmem>>, %arg1: memref<128x512xf32, #tpu.memory_space<vmem>>, %arg2: memref<128x128xf32, #tpu.memory_space<vmem>>, %arg3: memref<1x128xf32, #tpu.memory_space<vmem>>, %arg4: memref<8x128xf32, #tpu.memory_space<vmem>>) attributes {dimension_semantics = [], scalar_prefetch = 0 : i64, scratch_operands = 0 : i64, tpu.core_type = #tpu.core_type<tc>} {
    %cst = arith.constant 0.000000e+00 : f32
    %0 = vector.broadcast %cst : f32 to vector<8x128xf32>
    %cst_0 = arith.constant 0.000000e+00 : f32
    %1 = vector.broadcast %cst_0 : f32 to vector<8x128xf32>
    %c0 = arith.constant 0 : index
    %c0_1 = arith.constant 0 : index
    %c0_2 = arith.constant 0 : index
    %2 = vector.load %arg0[%c0, %c0_1, %c0_2] : memref<8x8x512xf32, #tpu.memory_space<vmem>>, vector<1x8x512xf32>
    %3 = vector.shape_cast %2 : vector<1x8x512xf32> to vector<8x512xf32>
    %c0_3 = arith.constant 0 : index
    %c0_4 = arith.constant 0 : index
    %4 = vector.load %arg1[%c0_3, %c0_4] : memref<128x512xf32, #tpu.memory_space<vmem>>, vector<128x512xf32>
    %cst_5 = arith.constant dense<0.000000e+00> : vector<8x512xf32>
    %5 = tpu.matmul %0, %4, %cst_5 {dimension_numbers = #tpu.dot_dimension_numbers<[1], [0], [0], [1], [0, 0, 1, 1], [], []>} : vector<8x128xf32>, vector<128x512xf32>, vector<8x512xf32> -> vector<8x512xf32>
    %6 = arith.addf %3, %5 : vector<8x512xf32>
    %7 = math.tanh %6 : vector<8x512xf32>
    %8 = vector.extract_strided_slice %7 {offsets = [0, 0], sizes = [8, 128], strides = [1, 1]} : vector<8x512xf32> to vector<8x128xf32>
    %cst_6 = arith.constant 5.000000e-01 : f32
    %9 = vector.broadcast %cst_6 : f32 to vector<8x128xf32>
    %10 = arith.mulf %9, %8 : vector<8x128xf32>
    %cst_7 = arith.constant 5.000000e-01 : f32
    %11 = vector.broadcast %cst_7 : f32 to vector<8x128xf32>
    %12 = arith.addf %10, %11 : vector<8x128xf32>
    %13 = vector.extract_strided_slice %7 {offsets = [0, 128], sizes = [8, 128], strides = [1, 1]} : vector<8x512xf32> to vector<8x128xf32>
    %cst_8 = arith.constant 5.000000e-01 : f32
    %14 = vector.broadcast %cst_8 : f32 to vector<8x128xf32>
    %15 = arith.mulf %14, %13 : vector<8x128xf32>
    %cst_9 = arith.constant 5.000000e-01 : f32
    %16 = vector.broadcast %cst_9 : f32 to vector<8x128xf32>
    %17 = arith.addf %15, %16 : vector<8x128xf32>
    %18 = vector.extract_strided_slice %7 {offsets = [0, 256], sizes = [8, 128], strides = [1, 1]} : vector<8x512xf32> to vector<8x128xf32>
    %cst_10 = arith.constant 5.000000e-01 : f32
    %19 = vector.broadcast %cst_10 : f32 to vector<8x128xf32>
    %20 = arith.mulf %19, %18 : vector<8x128xf32>
    %cst_11 = arith.constant 5.000000e-01 : f32
    %21 = vector.broadcast %cst_11 : f32 to vector<8x128xf32>
    %22 = arith.addf %20, %21 : vector<8x128xf32>
    %23 = vector.extract_strided_slice %7 {offsets = [0, 384], sizes = [8, 128], strides = [1, 1]} : vector<8x512xf32> to vector<8x128xf32>
    %24 = arith.mulf %17, %1 : vector<8x128xf32>
    %25 = arith.mulf %12, %23 : vector<8x128xf32>
    %26 = arith.addf %24, %25 : vector<8x128xf32>
    %27 = math.tanh %26 : vector<8x128xf32>
    %28 = arith.mulf %22, %27 : vector<8x128xf32>
    %cst_12 = arith.constant dense<0xFF800000> : vector<128xf32>
    %29 = vector.multi_reduction <maximumf>, %28, %cst_12 [0] : vector<8x128xf32> to vector<128xf32>
    %30 = vector.shape_cast %29 : vector<128xf32> to vector<1x128xf32>
    %c1 = arith.constant 1 : index
    %c0_13 = arith.constant 0 : index
    %c0_14 = arith.constant 0 : index
    %31 = vector.load %arg0[%c1, %c0_13, %c0_14] : memref<8x8x512xf32, #tpu.memory_space<vmem>>, vector<1x8x512xf32>
    %32 = vector.shape_cast %31 : vector<1x8x512xf32> to vector<8x512xf32>
    %c0_15 = arith.constant 0 : index
    %c0_16 = arith.constant 0 : index
    %33 = vector.load %arg1[%c0_15, %c0_16] : memref<128x512xf32, #tpu.memory_space<vmem>>, vector<128x512xf32>
    %cst_17 = arith.constant dense<0.000000e+00> : vector<8x512xf32>
    %34 = tpu.matmul %28, %33, %cst_17 {dimension_numbers = #tpu.dot_dimension_numbers<[1], [0], [0], [1], [0, 0, 1, 1], [], []>} : vector<8x128xf32>, vector<128x512xf32>, vector<8x512xf32> -> vector<8x512xf32>
    %35 = arith.addf %32, %34 : vector<8x512xf32>
    %36 = math.tanh %35 : vector<8x512xf32>
    %37 = vector.extract_strided_slice %36 {offsets = [0, 0], sizes = [8, 128], strides = [1, 1]} : vector<8x512xf32> to vector<8x128xf32>
    %cst_18 = arith.constant 5.000000e-01 : f32
    %38 = vector.broadcast %cst_18 : f32 to vector<8x128xf32>
    %39 = arith.mulf %38, %37 : vector<8x128xf32>
    %cst_19 = arith.constant 5.000000e-01 : f32
    %40 = vector.broadcast %cst_19 : f32 to vector<8x128xf32>
    %41 = arith.addf %39, %40 : vector<8x128xf32>
    %42 = vector.extract_strided_slice %36 {offsets = [0, 128], sizes = [8, 128], strides = [1, 1]} : vector<8x512xf32> to vector<8x128xf32>
    %cst_20 = arith.constant 5.000000e-01 : f32
    %43 = vector.broadcast %cst_20 : f32 to vector<8x128xf32>
    %44 = arith.mulf %43, %42 : vector<8x128xf32>
    %cst_21 = arith.constant 5.000000e-01 : f32
    %45 = vector.broadcast %cst_21 : f32 to vector<8x128xf32>
    %46 = arith.addf %44, %45 : vector<8x128xf32>
    %47 = vector.extract_strided_slice %36 {offsets = [0, 256], sizes = [8, 128], strides = [1, 1]} : vector<8x512xf32> to vector<8x128xf32>
    %cst_22 = arith.constant 5.000000e-01 : f32
    %48 = vector.broadcast %cst_22 : f32 to vector<8x128xf32>
    %49 = arith.mulf %48, %47 : vector<8x128xf32>
    %cst_23 = arith.constant 5.000000e-01 : f32
    %50 = vector.broadcast %cst_23 : f32 to vector<8x128xf32>
    %51 = arith.addf %49, %50 : vector<8x128xf32>
    %52 = vector.extract_strided_slice %36 {offsets = [0, 384], sizes = [8, 128], strides = [1, 1]} : vector<8x512xf32> to vector<8x128xf32>
    %53 = arith.mulf %46, %26 : vector<8x128xf32>
    %54 = arith.mulf %41, %52 : vector<8x128xf32>
    %55 = arith.addf %53, %54 : vector<8x128xf32>
    %56 = math.tanh %55 : vector<8x128xf32>
    %57 = arith.mulf %51, %56 : vector<8x128xf32>
    %cst_24 = arith.constant dense<0xFF800000> : vector<128xf32>
    %58 = vector.multi_reduction <maximumf>, %57, %cst_24 [0] : vector<8x128xf32> to vector<128xf32>
    %59 = vector.shape_cast %58 : vector<128xf32> to vector<1x128xf32>
    %c2 = arith.constant 2 : index
    %c0_25 = arith.constant 0 : index
    %c0_26 = arith.constant 0 : index
    %60 = vector.load %arg0[%c2, %c0_25, %c0_26] : memref<8x8x512xf32, #tpu.memory_space<vmem>>, vector<1x8x512xf32>
    %61 = vector.shape_cast %60 : vector<1x8x512xf32> to vector<8x512xf32>
    %c0_27 = arith.constant 0 : index
    %c0_28 = arith.constant 0 : index
    %62 = vector.load %arg1[%c0_27, %c0_28] : memref<128x512xf32, #tpu.memory_space<vmem>>, vector<128x512xf32>
    %cst_29 = arith.constant dense<0.000000e+00> : vector<8x512xf32>
    %63 = tpu.matmul %57, %62, %cst_29 {dimension_numbers = #tpu.dot_dimension_numbers<[1], [0], [0], [1], [0, 0, 1, 1], [], []>} : vector<8x128xf32>, vector<128x512xf32>, vector<8x512xf32> -> vector<8x512xf32>
    %64 = arith.addf %61, %63 : vector<8x512xf32>
    %65 = math.tanh %64 : vector<8x512xf32>
    %66 = vector.extract_strided_slice %65 {offsets = [0, 0], sizes = [8, 128], strides = [1, 1]} : vector<8x512xf32> to vector<8x128xf32>
    %cst_30 = arith.constant 5.000000e-01 : f32
    %67 = vector.broadcast %cst_30 : f32 to vector<8x128xf32>
    %68 = arith.mulf %67, %66 : vector<8x128xf32>
    %cst_31 = arith.constant 5.000000e-01 : f32
    %69 = vector.broadcast %cst_31 : f32 to vector<8x128xf32>
    %70 = arith.addf %68, %69 : vector<8x128xf32>
    %71 = vector.extract_strided_slice %65 {offsets = [0, 128], sizes = [8, 128], strides = [1, 1]} : vector<8x512xf32> to vector<8x128xf32>
    %cst_32 = arith.constant 5.000000e-01 : f32
    %72 = vector.broadcast %cst_32 : f32 to vector<8x128xf32>
    %73 = arith.mulf %72, %71 : vector<8x128xf32>
    %cst_33 = arith.constant 5.000000e-01 : f32
    %74 = vector.broadcast %cst_33 : f32 to vector<8x128xf32>
    %75 = arith.addf %73, %74 : vector<8x128xf32>
    %76 = vector.extract_strided_slice %65 {offsets = [0, 256], sizes = [8, 128], strides = [1, 1]} : vector<8x512xf32> to vector<8x128xf32>
    %cst_34 = arith.constant 5.000000e-01 : f32
    %77 = vector.broadcast %cst_34 : f32 to vector<8x128xf32>
    %78 = arith.mulf %77, %76 : vector<8x128xf32>
    %cst_35 = arith.constant 5.000000e-01 : f32
    %79 = vector.broadcast %cst_35 : f32 to vector<8x128xf32>
    %80 = arith.addf %78, %79 : vector<8x128xf32>
    %81 = vector.extract_strided_slice %65 {offsets = [0, 384], sizes = [8, 128], strides = [1, 1]} : vector<8x512xf32> to vector<8x128xf32>
    %82 = arith.mulf %75, %55 : vector<8x128xf32>
    %83 = arith.mulf %70, %81 : vector<8x128xf32>
    %84 = arith.addf %82, %83 : vector<8x128xf32>
    %85 = math.tanh %84 : vector<8x128xf32>
    %86 = arith.mulf %80, %85 : vector<8x128xf32>
    %cst_36 = arith.constant dense<0xFF800000> : vector<128xf32>
    %87 = vector.multi_reduction <maximumf>, %86, %cst_36 [0] : vector<8x128xf32> to vector<128xf32>
    %88 = vector.shape_cast %87 : vector<128xf32> to vector<1x128xf32>
    %c3 = arith.constant 3 : index
    %c0_37 = arith.constant 0 : index
    %c0_38 = arith.constant 0 : index
    %89 = vector.load %arg0[%c3, %c0_37, %c0_38] : memref<8x8x512xf32, #tpu.memory_space<vmem>>, vector<1x8x512xf32>
    %90 = vector.shape_cast %89 : vector<1x8x512xf32> to vector<8x512xf32>
    %c0_39 = arith.constant 0 : index
    %c0_40 = arith.constant 0 : index
    %91 = vector.load %arg1[%c0_39, %c0_40] : memref<128x512xf32, #tpu.memory_space<vmem>>, vector<128x512xf32>
    %cst_41 = arith.constant dense<0.000000e+00> : vector<8x512xf32>
    %92 = tpu.matmul %86, %91, %cst_41 {dimension_numbers = #tpu.dot_dimension_numbers<[1], [0], [0], [1], [0, 0, 1, 1], [], []>} : vector<8x128xf32>, vector<128x512xf32>, vector<8x512xf32> -> vector<8x512xf32>
    %93 = arith.addf %90, %92 : vector<8x512xf32>
    %94 = math.tanh %93 : vector<8x512xf32>
    %95 = vector.extract_strided_slice %94 {offsets = [0, 0], sizes = [8, 128], strides = [1, 1]} : vector<8x512xf32> to vector<8x128xf32>
    %cst_42 = arith.constant 5.000000e-01 : f32
    %96 = vector.broadcast %cst_42 : f32 to vector<8x128xf32>
    %97 = arith.mulf %96, %95 : vector<8x128xf32>
    %cst_43 = arith.constant 5.000000e-01 : f32
    %98 = vector.broadcast %cst_43 : f32 to vector<8x128xf32>
    %99 = arith.addf %97, %98 : vector<8x128xf32>
    %100 = vector.extract_strided_slice %94 {offsets = [0, 128], sizes = [8, 128], strides = [1, 1]} : vector<8x512xf32> to vector<8x128xf32>
    %cst_44 = arith.constant 5.000000e-01 : f32
    %101 = vector.broadcast %cst_44 : f32 to vector<8x128xf32>
    %102 = arith.mulf %101, %100 : vector<8x128xf32>
    %cst_45 = arith.constant 5.000000e-01 : f32
    %103 = vector.broadcast %cst_45 : f32 to vector<8x128xf32>
    %104 = arith.addf %102, %103 : vector<8x128xf32>
    %105 = vector.extract_strided_slice %94 {offsets = [0, 256], sizes = [8, 128], strides = [1, 1]} : vector<8x512xf32> to vector<8x128xf32>
    %cst_46 = arith.constant 5.000000e-01 : f32
    %106 = vector.broadcast %cst_46 : f32 to vector<8x128xf32>
    %107 = arith.mulf %106, %105 : vector<8x128xf32>
    %cst_47 = arith.constant 5.000000e-01 : f32
    %108 = vector.broadcast %cst_47 : f32 to vector<8x128xf32>
    %109 = arith.addf %107, %108 : vector<8x128xf32>
    %110 = vector.extract_strided_slice %94 {offsets = [0, 384], sizes = [8, 128], strides = [1, 1]} : vector<8x512xf32> to vector<8x128xf32>
    %111 = arith.mulf %104, %84 : vector<8x128xf32>
    %112 = arith.mulf %99, %110 : vector<8x128xf32>
    %113 = arith.addf %111, %112 : vector<8x128xf32>
    %114 = math.tanh %113 : vector<8x128xf32>
    %115 = arith.mulf %109, %114 : vector<8x128xf32>
    %cst_48 = arith.constant dense<0xFF800000> : vector<128xf32>
    %116 = vector.multi_reduction <maximumf>, %115, %cst_48 [0] : vector<8x128xf32> to vector<128xf32>
    %117 = vector.shape_cast %116 : vector<128xf32> to vector<1x128xf32>
    %c4 = arith.constant 4 : index
    %c0_49 = arith.constant 0 : index
    %c0_50 = arith.constant 0 : index
    %118 = vector.load %arg0[%c4, %c0_49, %c0_50] : memref<8x8x512xf32, #tpu.memory_space<vmem>>, vector<1x8x512xf32>
    %119 = vector.shape_cast %118 : vector<1x8x512xf32> to vector<8x512xf32>
    %c0_51 = arith.constant 0 : index
    %c0_52 = arith.constant 0 : index
    %120 = vector.load %arg1[%c0_51, %c0_52] : memref<128x512xf32, #tpu.memory_space<vmem>>, vector<128x512xf32>
    %cst_53 = arith.constant dense<0.000000e+00> : vector<8x512xf32>
    %121 = tpu.matmul %115, %120, %cst_53 {dimension_numbers = #tpu.dot_dimension_numbers<[1], [0], [0], [1], [0, 0, 1, 1], [], []>} : vector<8x128xf32>, vector<128x512xf32>, vector<8x512xf32> -> vector<8x512xf32>
    %122 = arith.addf %119, %121 : vector<8x512xf32>
    %123 = math.tanh %122 : vector<8x512xf32>
    %124 = vector.extract_strided_slice %123 {offsets = [0, 0], sizes = [8, 128], strides = [1, 1]} : vector<8x512xf32> to vector<8x128xf32>
    %cst_54 = arith.constant 5.000000e-01 : f32
    %125 = vector.broadcast %cst_54 : f32 to vector<8x128xf32>
    %126 = arith.mulf %125, %124 : vector<8x128xf32>
    %cst_55 = arith.constant 5.000000e-01 : f32
    %127 = vector.broadcast %cst_55 : f32 to vector<8x128xf32>
    %128 = arith.addf %126, %127 : vector<8x128xf32>
    %129 = vector.extract_strided_slice %123 {offsets = [0, 128], sizes = [8, 128], strides = [1, 1]} : vector<8x512xf32> to vector<8x128xf32>
    %cst_56 = arith.constant 5.000000e-01 : f32
    %130 = vector.broadcast %cst_56 : f32 to vector<8x128xf32>
    %131 = arith.mulf %130, %129 : vector<8x128xf32>
    %cst_57 = arith.constant 5.000000e-01 : f32
    %132 = vector.broadcast %cst_57 : f32 to vector<8x128xf32>
    %133 = arith.addf %131, %132 : vector<8x128xf32>
    %134 = vector.extract_strided_slice %123 {offsets = [0, 256], sizes = [8, 128], strides = [1, 1]} : vector<8x512xf32> to vector<8x128xf32>
    %cst_58 = arith.constant 5.000000e-01 : f32
    %135 = vector.broadcast %cst_58 : f32 to vector<8x128xf32>
    %136 = arith.mulf %135, %134 : vector<8x128xf32>
    %cst_59 = arith.constant 5.000000e-01 : f32
    %137 = vector.broadcast %cst_59 : f32 to vector<8x128xf32>
    %138 = arith.addf %136, %137 : vector<8x128xf32>
    %139 = vector.extract_strided_slice %123 {offsets = [0, 384], sizes = [8, 128], strides = [1, 1]} : vector<8x512xf32> to vector<8x128xf32>
    %140 = arith.mulf %133, %113 : vector<8x128xf32>
    %141 = arith.mulf %128, %139 : vector<8x128xf32>
    %142 = arith.addf %140, %141 : vector<8x128xf32>
    %143 = math.tanh %142 : vector<8x128xf32>
    %144 = arith.mulf %138, %143 : vector<8x128xf32>
    %cst_60 = arith.constant dense<0xFF800000> : vector<128xf32>
    %145 = vector.multi_reduction <maximumf>, %144, %cst_60 [0] : vector<8x128xf32> to vector<128xf32>
    %146 = vector.shape_cast %145 : vector<128xf32> to vector<1x128xf32>
    %c5 = arith.constant 5 : index
    %c0_61 = arith.constant 0 : index
    %c0_62 = arith.constant 0 : index
    %147 = vector.load %arg0[%c5, %c0_61, %c0_62] : memref<8x8x512xf32, #tpu.memory_space<vmem>>, vector<1x8x512xf32>
    %148 = vector.shape_cast %147 : vector<1x8x512xf32> to vector<8x512xf32>
    %c0_63 = arith.constant 0 : index
    %c0_64 = arith.constant 0 : index
    %149 = vector.load %arg1[%c0_63, %c0_64] : memref<128x512xf32, #tpu.memory_space<vmem>>, vector<128x512xf32>
    %cst_65 = arith.constant dense<0.000000e+00> : vector<8x512xf32>
    %150 = tpu.matmul %144, %149, %cst_65 {dimension_numbers = #tpu.dot_dimension_numbers<[1], [0], [0], [1], [0, 0, 1, 1], [], []>} : vector<8x128xf32>, vector<128x512xf32>, vector<8x512xf32> -> vector<8x512xf32>
    %151 = arith.addf %148, %150 : vector<8x512xf32>
    %152 = math.tanh %151 : vector<8x512xf32>
    %153 = vector.extract_strided_slice %152 {offsets = [0, 0], sizes = [8, 128], strides = [1, 1]} : vector<8x512xf32> to vector<8x128xf32>
    %cst_66 = arith.constant 5.000000e-01 : f32
    %154 = vector.broadcast %cst_66 : f32 to vector<8x128xf32>
    %155 = arith.mulf %154, %153 : vector<8x128xf32>
    %cst_67 = arith.constant 5.000000e-01 : f32
    %156 = vector.broadcast %cst_67 : f32 to vector<8x128xf32>
    %157 = arith.addf %155, %156 : vector<8x128xf32>
    %158 = vector.extract_strided_slice %152 {offsets = [0, 128], sizes = [8, 128], strides = [1, 1]} : vector<8x512xf32> to vector<8x128xf32>
    %cst_68 = arith.constant 5.000000e-01 : f32
    %159 = vector.broadcast %cst_68 : f32 to vector<8x128xf32>
    %160 = arith.mulf %159, %158 : vector<8x128xf32>
    %cst_69 = arith.constant 5.000000e-01 : f32
    %161 = vector.broadcast %cst_69 : f32 to vector<8x128xf32>
    %162 = arith.addf %160, %161 : vector<8x128xf32>
    %163 = vector.extract_strided_slice %152 {offsets = [0, 256], sizes = [8, 128], strides = [1, 1]} : vector<8x512xf32> to vector<8x128xf32>
    %cst_70 = arith.constant 5.000000e-01 : f32
    %164 = vector.broadcast %cst_70 : f32 to vector<8x128xf32>
    %165 = arith.mulf %164, %163 : vector<8x128xf32>
    %cst_71 = arith.constant 5.000000e-01 : f32
    %166 = vector.broadcast %cst_71 : f32 to vector<8x128xf32>
    %167 = arith.addf %165, %166 : vector<8x128xf32>
    %168 = vector.extract_strided_slice %152 {offsets = [0, 384], sizes = [8, 128], strides = [1, 1]} : vector<8x512xf32> to vector<8x128xf32>
    %169 = arith.mulf %162, %142 : vector<8x128xf32>
    %170 = arith.mulf %157, %168 : vector<8x128xf32>
    %171 = arith.addf %169, %170 : vector<8x128xf32>
    %172 = math.tanh %171 : vector<8x128xf32>
    %173 = arith.mulf %167, %172 : vector<8x128xf32>
    %cst_72 = arith.constant dense<0xFF800000> : vector<128xf32>
    %174 = vector.multi_reduction <maximumf>, %173, %cst_72 [0] : vector<8x128xf32> to vector<128xf32>
    %175 = vector.shape_cast %174 : vector<128xf32> to vector<1x128xf32>
    %c6 = arith.constant 6 : index
    %c0_73 = arith.constant 0 : index
    %c0_74 = arith.constant 0 : index
    %176 = vector.load %arg0[%c6, %c0_73, %c0_74] : memref<8x8x512xf32, #tpu.memory_space<vmem>>, vector<1x8x512xf32>
    %177 = vector.shape_cast %176 : vector<1x8x512xf32> to vector<8x512xf32>
    %c0_75 = arith.constant 0 : index
    %c0_76 = arith.constant 0 : index
    %178 = vector.load %arg1[%c0_75, %c0_76] : memref<128x512xf32, #tpu.memory_space<vmem>>, vector<128x512xf32>
    %cst_77 = arith.constant dense<0.000000e+00> : vector<8x512xf32>
    %179 = tpu.matmul %173, %178, %cst_77 {dimension_numbers = #tpu.dot_dimension_numbers<[1], [0], [0], [1], [0, 0, 1, 1], [], []>} : vector<8x128xf32>, vector<128x512xf32>, vector<8x512xf32> -> vector<8x512xf32>
    %180 = arith.addf %177, %179 : vector<8x512xf32>
    %181 = math.tanh %180 : vector<8x512xf32>
    %182 = vector.extract_strided_slice %181 {offsets = [0, 0], sizes = [8, 128], strides = [1, 1]} : vector<8x512xf32> to vector<8x128xf32>
    %cst_78 = arith.constant 5.000000e-01 : f32
    %183 = vector.broadcast %cst_78 : f32 to vector<8x128xf32>
    %184 = arith.mulf %183, %182 : vector<8x128xf32>
    %cst_79 = arith.constant 5.000000e-01 : f32
    %185 = vector.broadcast %cst_79 : f32 to vector<8x128xf32>
    %186 = arith.addf %184, %185 : vector<8x128xf32>
    %187 = vector.extract_strided_slice %181 {offsets = [0, 128], sizes = [8, 128], strides = [1, 1]} : vector<8x512xf32> to vector<8x128xf32>
    %cst_80 = arith.constant 5.000000e-01 : f32
    %188 = vector.broadcast %cst_80 : f32 to vector<8x128xf32>
    %189 = arith.mulf %188, %187 : vector<8x128xf32>
    %cst_81 = arith.constant 5.000000e-01 : f32
    %190 = vector.broadcast %cst_81 : f32 to vector<8x128xf32>
    %191 = arith.addf %189, %190 : vector<8x128xf32>
    %192 = vector.extract_strided_slice %181 {offsets = [0, 256], sizes = [8, 128], strides = [1, 1]} : vector<8x512xf32> to vector<8x128xf32>
    %cst_82 = arith.constant 5.000000e-01 : f32
    %193 = vector.broadcast %cst_82 : f32 to vector<8x128xf32>
    %194 = arith.mulf %193, %192 : vector<8x128xf32>
    %cst_83 = arith.constant 5.000000e-01 : f32
    %195 = vector.broadcast %cst_83 : f32 to vector<8x128xf32>
    %196 = arith.addf %194, %195 : vector<8x128xf32>
    %197 = vector.extract_strided_slice %181 {offsets = [0, 384], sizes = [8, 128], strides = [1, 1]} : vector<8x512xf32> to vector<8x128xf32>
    %198 = arith.mulf %191, %171 : vector<8x128xf32>
    %199 = arith.mulf %186, %197 : vector<8x128xf32>
    %200 = arith.addf %198, %199 : vector<8x128xf32>
    %201 = math.tanh %200 : vector<8x128xf32>
    %202 = arith.mulf %196, %201 : vector<8x128xf32>
    %cst_84 = arith.constant dense<0xFF800000> : vector<128xf32>
    %203 = vector.multi_reduction <maximumf>, %202, %cst_84 [0] : vector<8x128xf32> to vector<128xf32>
    %204 = vector.shape_cast %203 : vector<128xf32> to vector<1x128xf32>
    %c7 = arith.constant 7 : index
    %c0_85 = arith.constant 0 : index
    %c0_86 = arith.constant 0 : index
    %205 = vector.load %arg0[%c7, %c0_85, %c0_86] : memref<8x8x512xf32, #tpu.memory_space<vmem>>, vector<1x8x512xf32>
    %206 = vector.shape_cast %205 : vector<1x8x512xf32> to vector<8x512xf32>
    %c0_87 = arith.constant 0 : index
    %c0_88 = arith.constant 0 : index
    %207 = vector.load %arg1[%c0_87, %c0_88] : memref<128x512xf32, #tpu.memory_space<vmem>>, vector<128x512xf32>
    %cst_89 = arith.constant dense<0.000000e+00> : vector<8x512xf32>
    %208 = tpu.matmul %202, %207, %cst_89 {dimension_numbers = #tpu.dot_dimension_numbers<[1], [0], [0], [1], [0, 0, 1, 1], [], []>} : vector<8x128xf32>, vector<128x512xf32>, vector<8x512xf32> -> vector<8x512xf32>
    %209 = arith.addf %206, %208 : vector<8x512xf32>
    %210 = math.tanh %209 : vector<8x512xf32>
    %211 = vector.extract_strided_slice %210 {offsets = [0, 0], sizes = [8, 128], strides = [1, 1]} : vector<8x512xf32> to vector<8x128xf32>
    %cst_90 = arith.constant 5.000000e-01 : f32
    %212 = vector.broadcast %cst_90 : f32 to vector<8x128xf32>
    %213 = arith.mulf %212, %211 : vector<8x128xf32>
    %cst_91 = arith.constant 5.000000e-01 : f32
    %214 = vector.broadcast %cst_91 : f32 to vector<8x128xf32>
    %215 = arith.addf %213, %214 : vector<8x128xf32>
    %216 = vector.extract_strided_slice %210 {offsets = [0, 128], sizes = [8, 128], strides = [1, 1]} : vector<8x512xf32> to vector<8x128xf32>
    %cst_92 = arith.constant 5.000000e-01 : f32
    %217 = vector.broadcast %cst_92 : f32 to vector<8x128xf32>
    %218 = arith.mulf %217, %216 : vector<8x128xf32>
    %cst_93 = arith.constant 5.000000e-01 : f32
    %219 = vector.broadcast %cst_93 : f32 to vector<8x128xf32>
    %220 = arith.addf %218, %219 : vector<8x128xf32>
    %221 = vector.extract_strided_slice %210 {offsets = [0, 256], sizes = [8, 128], strides = [1, 1]} : vector<8x512xf32> to vector<8x128xf32>
    %cst_94 = arith.constant 5.000000e-01 : f32
    %222 = vector.broadcast %cst_94 : f32 to vector<8x128xf32>
    %223 = arith.mulf %222, %221 : vector<8x128xf32>
    %cst_95 = arith.constant 5.000000e-01 : f32
    %224 = vector.broadcast %cst_95 : f32 to vector<8x128xf32>
    %225 = arith.addf %223, %224 : vector<8x128xf32>
    %226 = vector.extract_strided_slice %210 {offsets = [0, 384], sizes = [8, 128], strides = [1, 1]} : vector<8x512xf32> to vector<8x128xf32>
    %227 = arith.mulf %220, %200 : vector<8x128xf32>
    %228 = arith.mulf %215, %226 : vector<8x128xf32>
    %229 = arith.addf %227, %228 : vector<8x128xf32>
    %230 = math.tanh %229 : vector<8x128xf32>
    %231 = arith.mulf %225, %230 : vector<8x128xf32>
    %cst_96 = arith.constant dense<0xFF800000> : vector<128xf32>
    %232 = vector.multi_reduction <maximumf>, %231, %cst_96 [0] : vector<8x128xf32> to vector<128xf32>
    %233 = vector.shape_cast %232 : vector<128xf32> to vector<1x128xf32>
    %234 = tpu.concatenate %30, %59, %88, %117, %146, %175, %204, %233 in 0 : vector<1x128xf32>, vector<1x128xf32>, vector<1x128xf32>, vector<1x128xf32>, vector<1x128xf32>, vector<1x128xf32>, vector<1x128xf32>, vector<1x128xf32> -> vector<8x128xf32>
    %235 = tpu.concatenate %233, %204, %175, %146, %117, %88, %59, %30 in 0 : vector<1x128xf32>, vector<1x128xf32>, vector<1x128xf32>, vector<1x128xf32>, vector<1x128xf32>, vector<1x128xf32>, vector<1x128xf32>, vector<1x128xf32> -> vector<8x128xf32>
    %236 = tpu.iota {dimensions = array<i32: 1>} : vector<8x128xi32>
    %c64_i32 = arith.constant 64 : i32
    %237 = vector.broadcast %c64_i32 : i32 to vector<8x128xi32>
    %238 = arith.cmpi slt, %236, %237 : vector<8x128xi32>
    %239 = arith.select %238, %234, %235 : vector<8x128xi1>, vector<8x128xf32>
    %c0_97 = arith.constant 0 : index
    %c0_98 = arith.constant 0 : index
    %240 = vector.load %arg2[%c0_97, %c0_98] : memref<128x128xf32, #tpu.memory_space<vmem>>, vector<128x128xf32>
    %cst_99 = arith.constant dense<0.000000e+00> : vector<8x128xf32>
    %241 = tpu.matmul %239, %240, %cst_99 {dimension_numbers = #tpu.dot_dimension_numbers<[1], [0], [0], [1], [0, 0, 1, 1], [], []>} : vector<8x128xf32>, vector<128x128xf32>, vector<8x128xf32> -> vector<8x128xf32>
    %c0_100 = arith.constant 0 : index
    %c0_101 = arith.constant 0 : index
    %242 = vector.load %arg3[%c0_100, %c0_101] : memref<1x128xf32, #tpu.memory_space<vmem>>, vector<1x128xf32>
    %243 = vector.broadcast %242 : vector<1x128xf32> to vector<8x128xf32>
    %244 = arith.addf %241, %243 : vector<8x128xf32>
    %c0_102 = arith.constant 0 : index
    %c0_103 = arith.constant 0 : index
    %245 = vector.load %arg4[%c0_102, %c0_103] : memref<8x128xf32, #tpu.memory_space<vmem>>, vector<8x128xf32>
    tpu.vector_store %arg4[%c0_102, %c0_103], %244 {strides = array<i32>} : memref<8x128xf32, #tpu.memory_space<vmem>>, vector<8x128xf32>,
    return
  }
}

</mosaic_0001>

<bundles_post_ra>
// kernel: tpu_custom_call.1
= control target key start
LH: loop header
LB: loop body
LE: loop exit
PB: predicated region body
PF: predicated region fallthrough
CT: control target
= control target key end

     0   :  { %9 = vsyncpa [#allocation3], 0  ;;  %s2871_s0 = inlined_call_operand.hbm [shape: f32[8,8,512], index: 0, kind: input, shape index: {}]   ;;  %s2872_s1 = inlined_call_operand.hbm [shape: f32[128,512], index: 1, kind: input, shape index: {}]   ;;  %s2873_s2 = inlined_call_operand.hbm [shape: f32[128,128], index: 2, kind: input, shape index: {}]   ;;  %s2874_s3 = inlined_call_operand.vmem [shape: f32[1,128], index: 3, kind: input, shape index: {}]   ;;  %s2875_s4 = inlined_call_operand.hbm [shape: f32[8,128], index: 4, kind: output, shape index: {}]  }
   0x1   :  { %10 = vsyncpa [#allocation6], 0 }
   0x2   :  { %11 = vsyncpa [#allocation4], 0  ;;  %s1926_s15 = smov [#allocation5]   ;;  %s1927_s17 = smov [#allocation2]  }
   0x3   :  { %s29_s16 = sshll.u32 %s1926_s15, 4  ;;  %s17_s18 = sshll.u32 %s1927_s17, 4  ;;  %s30_s16 = int_to_ptr.vmem [resolvable:$true] %s29_s16  ;;  %s18_s18 = int_to_ptr.vmem [resolvable:$true] %s17_s18 }
   0x4   :  { %s1848_s19 = scalar_lea.vmem %s30_s16, 8192  ;;  %p1853_p1 = scmp.lt.s32.totalorder %s30_s16, %s30_s16 }
   0x5   :  { %p1849_p0 = scmp.ne.s32.totalorder %s30_s16, %s1848_s19  ;;  %p1854_p2 = scmp.lt.s32.totalorder %s1848_s19, %s1848_s19 }
   0x7   :  { %p1855_p3 = por %p1854_p2, %p1853_p1 }
   0x9   :  { %p1856_p4 = pnand %p1855_p3, %p1849_p0 }
   0xb   :  { %1859 = shalt.err (!%p1856_p4)
}
   0xc   :  { %s1928_s20 = smov 512   ;;  %s1929_s21 = smov 32  }
   0xd   :  { %35 = dma.hbm_to_vmem [thread:$0]  %s2872_s1, 8192, %s30_s16, [#allocation6], %s1928_s20, %s1928_s20, %s1929_s21  }
   0xe   :  { %s1868_s24 = scalar_lea.vmem %s18_s18, 4096  ;;  %p1873_p6 = scmp.lt.s32.totalorder %s18_s18, %s18_s18 }
   0xf   :  { %p1869_p5 = scmp.ne.s32.totalorder %s18_s18, %s1868_s24  ;;  %p1874_p7 = scmp.lt.s32.totalorder %s1868_s24, %s1868_s24 }
  0x11   :  { %p1875_p8 = por %p1874_p7, %p1873_p6 }
  0x13   :  { %p1876_p9 = pnand %p1875_p8, %p1869_p5 }
  0x15   :  { %1879 = shalt.err (!%p1876_p9)
}
  0x16   :  { %23 = dma.hbm_to_vmem [thread:$0]  %s2871_s0, 4096, %s18_s18, [#allocation3], %s1928_s20, %s1928_s20, %s1929_s21  }
  0x17   :  { %s1930_s27 = smov [#allocation7]  }
  0x18   :  { %s41_s28 = sshll.u32 %s1930_s27, 4  ;;  %s42_s28 = int_to_ptr.vmem [resolvable:$true] %s41_s28 }
  0x19   :  { %s1888_s29 = scalar_lea.vmem %s42_s28, 2048  ;;  %p1893_p11 = scmp.lt.s32.totalorder %s42_s28, %s42_s28 }
  0x1a   :  { %p1889_p10 = scmp.ne.s32.totalorder %s42_s28, %s1888_s29  ;;  %p1894_p12 = scmp.lt.s32.totalorder %s1888_s29, %s1888_s29 }
  0x1c   :  { %p1895_p13 = por %p1894_p12, %p1893_p11 }
  0x1e   :  { %p1896_p0 = pnand %p1895_p13, %p1889_p10 }
  0x20   :  { %1899 = shalt.err (!%p1896_p0)
}
  0x21   :  { %s1931_s1 = smov 128   ;;  %s1932_s30 = smov 8  }
  0x22   :  { %47 = dma.hbm_to_vmem [thread:$0]  %s2873_s2, 2048, %s42_s28, [#allocation6], %s1931_s1, %s1931_s1, %s1932_s30  }
  0x23   :  { %1920 = dma.done.wait [#allocation3], 4096  }
  0x24   :  { %1921 = vsyncadd [#allocation3], 4294963200 }
  0x25   :  { %1922 = dma.done.wait [#allocation6], 10240  }
  0x26   :  { %1923 = vsyncadd [#allocation6], 4294957056  ;;  %v2876_v0 = vmov 0.0   ;;  %v1972_v1 = vld [vmem:[#allocation5 + $0x1e8] sm:$0xff]  ;;  %v1974_v2 = vld [vmem:[#allocation5 + $0x1e0] sm:$0xff]  ;;  %vm1498_vm0 = vcmask 1040384  }
  0x27   :  { %191 = vmatprep.mubr.f32.mxu0 %v2876_v0  ;;  %262 = vmatprep.mubr.f32.mxu1 %v2876_v0  ;;  %2964 = vst [vmem:[#allocation12_spill] sm:$0xff] %v1972_v1  ;;  %v1976_v3 = vld [vmem:[#allocation5 + $0x1c8] sm:$0xff]  ;;  %v1979_v4 = vld [vmem:[#allocation5 + $0x1f8] sm:$0xff]  ;;  %v1981_v5 = vld [vmem:[#allocation5 + $0x1c0] sm:$0xff]  ;;  %vm1500_vm1 = vcmask 1041408   ;;  %vm1502_vm2 = vcmask 1042432  }
  0x28   :  { %127 = vmatprep.subr.mxu0 %v1972_v1  ;;  %2965 = vst [vmem:[#allocation13_spill] sm:$0xff] %v1979_v4  ;;  %v1983_v6 = vld [vmem:[#allocation5 + $0x1f0] sm:$0xff]  ;;  %198 = vmatprep.subr.mxu1 %v1979_v4  ;;  %v1987_v7 = vld [vmem:[#allocation5 + $0x1a8] sm:$0xff]  ;;  %v1989_v8 = vld [vmem:[#allocation5 + $0x1d8] sm:$0xff]  ;;  %vm1504_vm3 = vcmask 1043456   ;;  %vm1506_vm4 = vcmask 1044480  }
  0x29   :  { %128 = vmatpush1.msra.mxu0 %v1974_v2  ;;  %199 = vmatpush1.msra.mxu1 %v1983_v6  ;;  %v1993_v9 = vld [vmem:[#allocation5 + $0x1a0] sm:$0xff]  ;;  %v1995_v10 = vld [vmem:[#allocation5 + $0x1d0] sm:$0xff]  ;;  %v1997_v11 = vld [vmem:[#allocation5 + $0x1b8] sm:$0xff]  ;;  %vm1508_vm5 = vcmask 1045504   ;;  %vm1934_vm6 = vmmov 0   ;;  %vm1510_vm7 = vcmask 1046528  }
  0x2a   :  { %129 = vmatprep.subr.mxu0 %v1976_v3  ;;  %200 = vmatprep.subr.mxu1 %v1989_v8  ;;  %v2001_v12 = vld [vmem:[#allocation5 + $0x188] sm:$0xff]  ;;  %v2003_v13 = vld [vmem:[#allocation5 + $0x1b0] sm:$0xff]  ;;  %v2007_v14 = vld [vmem:[#allocation5 + $0x180] sm:$0xff]  ;;  %s1935_s7 = smov [#allocation8]  }
  0x2b   :  { %130 = vmatpush1.msra.mxu0 %v1981_v5  ;;  %201 = vmatpush1.msra.mxu1 %v1995_v10  ;;  %v2009_v15 = vld [vmem:[#allocation5 + $0x198] sm:$0xff]  ;;  %v2013_v16 = vld [vmem:[#allocation5 + $0x168] sm:$0xff]  ;;  %v2015_v17 = vld [vmem:[#allocation5 + $0x190] sm:$0xff]  ;;  %s1623_s8 = sshll.u32 %s1935_s7, 4  ;;  %s1624_s8 = int_to_ptr.vmem [resolvable:$true] %s1623_s8 }
  0x2c   :  { %131 = vmatprep.subr.mxu0 %v1987_v7  ;;  %202 = vmatprep.subr.mxu1 %v1997_v11  ;;  %v2019_v18 = vld [vmem:[#allocation5 + $0x160] sm:$0xff]  ;;  %v2021_v19 = vld [vmem:[#allocation5 + $0x178] sm:$0xff]  ;;  %v2025_v20 = vld [vmem:[#allocation5 + $0x148] sm:$0xff]  ;;  %s1900_s9 = scalar_lea.vmem %s1624_s8, 128  ;;  %p1905_p2 = scmp.lt.s32.totalorder %s1624_s8, %s1624_s8 }
  0x2d   :  { %132 = vmatpush1.msra.mxu0 %v1993_v9  ;;  %203 = vmatpush1.msra.mxu1 %v2003_v13  ;;  %v2027_v21 = vld [vmem:[#allocation5 + $0x170] sm:$0xff]  ;;  %v2031_v22 = vld [vmem:[#allocation5 + $0x140] sm:$0xff]  ;;  %v2033_v23 = vld [vmem:[#allocation5 + $0x158] sm:$0xff]  ;;  %p1901_p1 = scmp.ne.s32.totalorder %s1624_s8, %s1900_s9  ;;  %p1906_p3 = scmp.lt.s32.totalorder %s1900_s9, %s1900_s9 }
  0x2e   :  { %133 = vmatprep.subr.mxu0 %v2001_v12  ;;  %204 = vmatprep.subr.mxu1 %v2009_v15  ;;  %v2037_v24 = vld [vmem:[#allocation5 + $0x128] sm:$0xff]  ;;  %v2039_v25 = vld [vmem:[#allocation5 + $0x150] sm:$0xff]  ;;  %v2043_v26 = vld [vmem:[#allocation5 + $0x120] sm:$0xff] }
  0x2f   :  { %134 = vmatpush1.msra.mxu0 %v2007_v14  ;;  %205 = vmatpush1.msra.mxu1 %v2015_v17  ;;  %v2045_v27 = vld [vmem:[#allocation5 + $0x138] sm:$0xff]  ;;  %v2049_v28 = vld [vmem:[#allocation5 + $0x108] sm:$0xff]  ;;  %v2051_v29 = vld [vmem:[#allocation5 + $0x130] sm:$0xff]  ;;  %p1907_p4 = por %p1906_p3, %p1905_p2 }
  0x30   :  { %135 = vmatprep.subr.mxu0 %v2013_v16  ;;  %206 = vmatprep.subr.mxu1 %v2021_v19  ;;  %v2055_v30 = vld [vmem:[#allocation5 + $0x100] sm:$0xff]  ;;  %v2057_v31 = vld [vmem:[#allocation5 + $0x118] sm:$0xff]  ;;  %v2061_v32 = vld [vmem:[#allocation5 + $0xe8] sm:$0xff] }
  0x31   :  { %136 = vmatpush1.msra.mxu0 %v2019_v18  ;;  %207 = vmatpush1.msra.mxu1 %v2027_v21  ;;  %v2063_v33 = vld [vmem:[#allocation5 + $0x110] sm:$0xff]  ;;  %v2067_v34 = vld [vmem:[#allocation5 + $0xe0] sm:$0xff]  ;;  %v2069_v35 = vld [vmem:[#allocation5 + $0xf8] sm:$0xff]  ;;  %p1908_p5 = pnand %p1907_p4, %p1901_p1 }
  0x32   :  { %137 = vmatprep.subr.mxu0 %v2025_v20  ;;  %208 = vmatprep.subr.mxu1 %v2033_v23  ;;  %v2073_v36 = vld [vmem:[#allocation5 + $0xc8] sm:$0xff]  ;;  %v2075_v37 = vld [vmem:[#allocation5 + $0xf0] sm:$0xff]  ;;  %v2079_v38 = vld [vmem:[#allocation5 + $0xc0] sm:$0xff] }
  0x33   :  { %138 = vmatpush1.msra.mxu0 %v2031_v22  ;;  %209 = vmatpush1.msra.mxu1 %v2039_v25  ;;  %v2081_v39 = vld [vmem:[#allocation5 + $0xd8] sm:$0xff]  ;;  %v2085_v40 = vld [vmem:[#allocation5 + $0xa8] sm:$0xff]  ;;  %v2087_v41 = vld [vmem:[#allocation5 + $0xd0] sm:$0xff] }
  0x34   :  { %139 = vmatprep.subr.mxu0 %v2037_v24  ;;  %210 = vmatprep.subr.mxu1 %v2045_v27  ;;  %v2091_v42 = vld [vmem:[#allocation5 + $0xa0] sm:$0xff]  ;;  %v2093_v43 = vld [vmem:[#allocation5 + $0xb8] sm:$0xff]  ;;  %v2097_v44 = vld [vmem:[#allocation5 + $0x88] sm:$0xff] }
  0x35   :  { %140 = vmatpush1.msra.mxu0 %v2043_v26  ;;  %211 = vmatpush1.msra.mxu1 %v2051_v29  ;;  %2966 = vst [vmem:[#allocation14_spill] sm:$0xff] %v2097_v44  ;;  %v2099_v45 = vld [vmem:[#allocation5 + $0xb0] sm:$0xff]  ;;  %v2103_v46 = vld [vmem:[#allocation5 + $0x80] sm:$0xff]  ;;  %v2105_v47 = vld [vmem:[#allocation5 + $0x98] sm:$0xff] }
  0x36   :  { %141 = vmatprep.subr.mxu0 %v2049_v28  ;;  %212 = vmatprep.subr.mxu1 %v2057_v31  ;;  %2967 = vst [vmem:[#allocation15_spill] sm:$0xff] %v2103_v46  ;;  %2968 = vst [vmem:[#allocation16_spill] sm:$0xff] %v2105_v47  ;;  %v2109_v48 = vld [vmem:[#allocation5 + $0x68] sm:$0xff]  ;;  %v2111_v49 = vld [vmem:[#allocation5 + $0x90] sm:$0xff] }
  0x37   :  { %142 = vmatpush1.msra.mxu0 %v2055_v30  ;;  %213 = vmatpush1.msra.mxu1 %v2063_v33  ;;  %2969 = vst [vmem:[#allocation17_spill] sm:$0xff] %v2109_v48  ;;  %2970 = vst [vmem:[#allocation18_spill] sm:$0xff] %v2111_v49  ;;  %v2115_v50 = vld [vmem:[#allocation5 + $0x60] sm:$0xff]  ;;  %v2117_v51 = vld [vmem:[#allocation5 + $0x78] sm:$0xff] }
  0x38   :  { %143 = vmatprep.subr.mxu0 %v2061_v32  ;;  %214 = vmatprep.subr.mxu1 %v2069_v35  ;;  %2971 = vst [vmem:[#allocation19_spill] sm:$0xff] %v2115_v50  ;;  %2972 = vst [vmem:[#allocation20_spill] sm:$0xff] %v2117_v51  ;;  %v2121_v52 = vld [vmem:[#allocation5 + $0x48] sm:$0xff]  ;;  %v2123_v53 = vld [vmem:[#allocation5 + $0x70] sm:$0xff] }
  0x39   :  { %144 = vmatpush1.msra.mxu0 %v2067_v34  ;;  %215 = vmatpush1.msra.mxu1 %v2075_v37  ;;  %2973 = vst [vmem:[#allocation21_spill] sm:$0xff] %v2121_v52  ;;  %2974 = vst [vmem:[#allocation22_spill] sm:$0xff] %v2123_v53  ;;  %v2127_v54 = vld [vmem:[#allocation5 + $0x40] sm:$0xff]  ;;  %v2129_v55 = vld [vmem:[#allocation5 + $0x58] sm:$0xff] }
  0x3a   :  { %145 = vmatprep.subr.mxu0 %v2073_v36  ;;  %216 = vmatprep.subr.mxu1 %v2081_v39  ;;  %2975 = vst [vmem:[#allocation23_spill] sm:$0xff] %v2127_v54  ;;  %2976 = vst [vmem:[#allocation24_spill] sm:$0xff] %v2129_v55  ;;  %v2133_v56 = vld [vmem:[#allocation5 + $0x28] sm:$0xff]  ;;  %v2135_v57 = vld [vmem:[#allocation5 + $0x50] sm:$0xff] }
  0x3b   :  { %146 = vmatpush1.msra.mxu0 %v2079_v38  ;;  %217 = vmatpush1.msra.mxu1 %v2087_v41  ;;  %2977 = vst [vmem:[#allocation25_spill] sm:$0xff] %v2133_v56  ;;  %2978 = vst [vmem:[#allocation26_spill] sm:$0xff] %v2135_v57  ;;  %v2139_v58 = vld [vmem:[#allocation5 + $0x20] sm:$0xff]  ;;  %v2141_v59 = vld [vmem:[#allocation5 + $0x38] sm:$0xff] }
  0x3c   :  { %147 = vmatprep.subr.mxu0 %v2085_v40  ;;  %218 = vmatprep.subr.mxu1 %v2093_v43  ;;  %2979 = vst [vmem:[#allocation27_spill] sm:$0xff] %v2139_v58  ;;  %2980 = vst [vmem:[#allocation28_spill] sm:$0xff] %v2141_v59  ;;  %v2145_v60 = vld [vmem:[#allocation5 + $0x8] sm:$0xff]  ;;  %v2147_v61 = vld [vmem:[#allocation5 + $0x30] sm:$0xff] }
  0x3d   :  { %148 = vmatpush1.msra.mxu0 %v2091_v42  ;;  %219 = vmatpush1.msra.mxu1 %v2099_v45  ;;  %2981 = vst [vmem:[#allocation29_spill] sm:$0xff] %v2145_v60  ;;  %2982 = vst [vmem:[#allocation30_spill] sm:$0xff] %v2147_v61  ;;  %v2151_v62 = vld [vmem:[#allocation5] sm:$0xff]  ;;  %v2153_v63 = vld [vmem:[#allocation5 + $0x18] sm:$0xff] }
  0x3e   :  { %149 = vmatprep.subr.mxu0 %v2097_v44  ;;  %220 = vmatprep.subr.mxu1 %v2105_v47  ;;  %2983 = vst [vmem:[#allocation31_spill] sm:$0xff] %v2151_v62  ;;  %2984 = vst [vmem:[#allocation32_spill] sm:$0xff] %v2153_v63  ;;  %v2157_v0 = vld [vmem:[#allocation5 + $0x10] sm:$0xff] }
  0x3f   :  { %150 = vmatpush1.msra.mxu0 %v2103_v46  ;;  %221 = vmatpush1.msra.mxu1 %v2111_v49  ;;  %2985 = vst [vmem:[#allocation33_spill] sm:$0xff] %v2157_v0 }
  0x40   :  { %151 = vmatprep.subr.mxu0 %v2109_v48  ;;  %222 = vmatprep.subr.mxu1 %v2117_v51 }
  0x41   :  { %152 = vmatpush1.msra.mxu0 %v2115_v50  ;;  %223 = vmatpush1.msra.mxu1 %v2123_v53 }
  0x42   :  { %153 = vmatprep.subr.mxu0 %v2121_v52  ;;  %224 = vmatprep.subr.mxu1 %v2129_v55 }
  0x43   :  { %154 = vmatpush1.msra.mxu0 %v2127_v54  ;;  %225 = vmatpush1.msra.mxu1 %v2135_v57 }
  0x44   :  { %155 = vmatprep.subr.mxu0 %v2133_v56  ;;  %226 = vmatprep.subr.mxu1 %v2141_v59  ;;  %v2986_v56 = vmov 0.0  }
  0x45   :  { %156 = vmatpush1.msra.mxu0 %v2139_v58  ;;  %227 = vmatpush1.msra.mxu1 %v2147_v61 }
  0x46   :  { %157 = vmatprep.subr.mxu0 %v2145_v60  ;;  %228 = vmatprep.subr.mxu1 %v2153_v63 }
  0x47   :  { %158 = vmatpush1.msra.mxu0 %v2151_v62  ;;  %229 = vmatpush1.msra.mxu1 %v2157_v0 }
  0x48   :  { %192 = vmatmul.mubr.f32.vlgmr.msra.gmra.mxu0 %v2986_v56  ;;  %263 = vmatmul.mubr.f32.vlgmr.msra.gmra.mxu1 %v2986_v56 }
  0x49   :  { %299 = vmatprep.subr.mxu0 %v1972_v1  ;;  %370 = vmatprep.subr.mxu1 %v1979_v4 }
  0x4a   :  { %300 = vmatpush1.msra.mxu0 %v1974_v2  ;;  %371 = vmatpush1.msra.mxu1 %v1983_v6 }
  0x4b   :  { %301 = vmatprep.subr.mxu0 %v1976_v3  ;;  %372 = vmatprep.subr.mxu1 %v1989_v8 }
  0x4c   :  { %302 = vmatpush1.msra.mxu0 %v1981_v5  ;;  %373 = vmatpush1.msra.mxu1 %v1995_v10 }
  0x4d   :  { %303 = vmatprep.subr.mxu0 %v1987_v7  ;;  %374 = vmatprep.subr.mxu1 %v1997_v11 }
  0x4e   :  { %304 = vmatpush1.msra.mxu0 %v1993_v9  ;;  %375 = vmatpush1.msra.mxu1 %v2003_v13 }
  0x4f   :  { %305 = vmatprep.subr.mxu0 %v2001_v12  ;;  %376 = vmatprep.subr.mxu1 %v2009_v15 }
  0x50   :  { %306 = vmatpush1.msra.mxu0 %v2007_v14  ;;  %377 = vmatpush1.msra.mxu1 %v2015_v17 }
  0x51   :  { %307 = vmatprep.subr.mxu0 %v2013_v16  ;;  %378 = vmatprep.subr.mxu1 %v2021_v19 }
  0x52   :  { %308 = vmatpush1.msra.mxu0 %v2019_v18  ;;  %379 = vmatpush1.msra.mxu1 %v2027_v21 }
  0x53   :  { %309 = vmatprep.subr.mxu0 %v2025_v20  ;;  %380 = vmatprep.subr.mxu1 %v2033_v23 }
  0x54   :  { %310 = vmatpush1.msra.mxu0 %v2031_v22  ;;  %381 = vmatpush1.msra.mxu1 %v2039_v25 }
  0x55   :  { %311 = vmatprep.subr.mxu0 %v2037_v24  ;;  %382 = vmatprep.subr.mxu1 %v2045_v27 }
  0x56   :  { %312 = vmatpush1.msra.mxu0 %v2043_v26  ;;  %383 = vmatpush1.msra.mxu1 %v2051_v29 }
  0x57   :  { %313 = vmatprep.subr.mxu0 %v2049_v28  ;;  %384 = vmatprep.subr.mxu1 %v2057_v31 }
  0x58   :  { %314 = vmatpush1.msra.mxu0 %v2055_v30  ;;  %385 = vmatpush1.msra.mxu1 %v2063_v33 }
  0x59   :  { %315 = vmatprep.subr.mxu0 %v2061_v32  ;;  %386 = vmatprep.subr.mxu1 %v2069_v35 }
  0x5a   :  { %316 = vmatpush1.msra.mxu0 %v2067_v34  ;;  %387 = vmatpush1.msra.mxu1 %v2075_v37 }
  0x5b   :  { %317 = vmatprep.subr.mxu0 %v2073_v36  ;;  %388 = vmatprep.subr.mxu1 %v2081_v39 }
  0x5c   :  { %318 = vmatpush1.msra.mxu0 %v2079_v38  ;;  %389 = vmatpush1.msra.mxu1 %v2087_v41 }
  0x5d   :  { %319 = vmatprep.subr.mxu0 %v2085_v40  ;;  %390 = vmatprep.subr.mxu1 %v2093_v43 }
  0x5e   :  { %320 = vmatpush1.msra.mxu0 %v2091_v42  ;;  %391 = vmatpush1.msra.mxu1 %v2099_v45 }
  0x5f   :  { %321 = vmatprep.subr.mxu0 %v2097_v44  ;;  %392 = vmatprep.subr.mxu1 %v2105_v47  ;;  %v2987_v47 = vld [vmem:[#allocation25_spill] sm:$0xff] }
  0x60   :  { %322 = vmatpush1.msra.mxu0 %v2103_v46  ;;  %393 = vmatpush1.msra.mxu1 %v2111_v49 }
  0x61   :  { %323 = vmatprep.subr.mxu0 %v2109_v48  ;;  %394 = vmatprep.subr.mxu1 %v2117_v51 }
  0x62   :  { %324 = vmatpush1.msra.mxu0 %v2115_v50  ;;  %395 = vmatpush1.msra.mxu1 %v2123_v53 }
  0x63   :  { %325 = vmatprep.subr.mxu0 %v2121_v52  ;;  %396 = vmatprep.subr.mxu1 %v2129_v55 }
  0x64   :  { %326 = vmatpush1.msra.mxu0 %v2127_v54  ;;  %397 = vmatpush1.msra.mxu1 %v2135_v57 }
  0x65   :  { %327 = vmatprep.subr.mxu0 %v2987_v47  ;;  %398 = vmatprep.subr.mxu1 %v2141_v59  ;;  %v59_v59 = vld [vmem:[#allocation2] sm:$0xff]  ;;  %v60_v47 = vld [vmem:[#allocation2 + $0x8] sm:$0xff] }
  0x66   :  { %328 = vmatpush1.msra.mxu0 %v2139_v58  ;;  %399 = vmatpush1.msra.mxu1 %v2147_v61 }
  0x67   :  { %329 = vmatprep.subr.mxu0 %v2145_v60  ;;  %400 = vmatprep.subr.mxu1 %v2153_v63  ;;  %v62_v60 = vld [vmem:[#allocation2 + $0x18] sm:$0xff] }
  0x68   :  { %330 = vmatpush1.msra.mxu0 %v2151_v62  ;;  %363 = vmatprep.mubr.f32.mxu0 %v2986_v56 }
  0x69   :  { %401 = vmatpush1.msra.mxu1 %v2157_v0  ;;  %434 = vmatprep.mubr.f32.mxu1 %v2986_v56  ;;  %v61_v0 = vld [vmem:[#allocation2 + $0x10] sm:$0xff] }
  0x6a   :  { %471 = vmatprep.subr.mxu0 %v1972_v1  ;;  %542 = vmatprep.subr.mxu1 %v1979_v4 }
 0x108   :  { %v193_v58 = vpop.f32.mrf.mxu0  ;;  %v264_v57 = vpop.f32.mrf.mxu1 }
 0x109   :  { %v269_v61 = vadd.f32 %v193_v58, %v59_v59  ;;  %v271_v52 = vadd.f32 %v264_v57, %v61_v0  ;;  %v2988_v0 = vld [vmem:[#allocation16_spill] sm:$0xff]  ;;  %v2997_v57 = vld [vmem:[#allocation26_spill] sm:$0xff] }
 0x10a   :  { %v195_v54 = vpop.f32.mrf.mxu0  ;;  %v266_v62 = vpop.f32.mrf.mxu1 }
 0x10b   :  { %1696 = vtanh.f32 %v269_v61  ;;  %v270_v63 = vadd.f32 %v195_v54, %v60_v47  ;;  %v272_v55 = vadd.f32 %v266_v62, %v62_v60  ;;  %v2998_v62 = vld [vmem:[#allocation25_spill] sm:$0xff] }
 0x10d   :  { %1698 = vtanh.f32 %v270_v63  ;;  %v2999_v63 = vld [vmem:[#allocation28_spill] sm:$0xff] }
 0x10e   :  { %1700 = vtanh.f32 %v272_v55 }
 0x10f   :  { %1702 = vtanh.f32 %v271_v52  ;;  %v2994_v52 = vld [vmem:[#allocation21_spill] sm:$0xff] }
 0x118   :  { %v1697_v56 = vpop.eup %1696 }
 0x119   :  { %v277_v53 = vmul.f32 0.5, %v1697_v56  ;;  %v2996_v56 = vld [vmem:[#allocation23_spill] sm:$0xff] }
 0x11a   :  { %v1699_v1 = vpop.eup %1698 }
 0x11b   :  { %v278_v50 = vadd.f32 0.5, %v277_v53  ;;  %v279_v4 = vmul.f32 0.5, %v1699_v1  ;;  %v1701_v51 = vpop.eup %1700  ;;  %v2989_v1 = vld [vmem:[#allocation18_spill] sm:$0xff]  ;;  %v2995_v53 = vld [vmem:[#allocation24_spill] sm:$0xff] }
 0x11c   :  { %v1703_v47 = vpop.eup %1702 }
 0x11d   :  { %v280_v48 = vadd.f32 0.5, %v279_v4  ;;  %v284_v59 = vmul.f32 %v1701_v51, %v278_v50  ;;  %v281_v54 = vmul.f32 0.5, %v1703_v47  ;;  %v2990_v4 = vld [vmem:[#allocation17_spill] sm:$0xff]  ;;  %v2992_v50 = vld [vmem:[#allocation19_spill] sm:$0xff]  ;;  %v2993_v51 = vld [vmem:[#allocation22_spill] sm:$0xff] }
 0x11e   :  { %v3002_v47 = vld [vmem:[#allocation29_spill] sm:$0xff] }
 0x11f   :  { %v283_v58 = vmul.f32 0.0, %v280_v48  ;;  %v282_v60 = vadd.f32 0.5, %v281_v54  ;;  %v2991_v48 = vld [vmem:[#allocation20_spill] sm:$0xff] }
 0x120   :  { %v3003_v54 = vld [vmem:[#allocation32_spill] sm:$0xff] }
 0x121   :  { %v2234_v49 = vadd.f32 %v284_v59, %v283_v58  ;;  %v3000_v58 = vld [vmem:[#allocation27_spill] sm:$0xff]  ;;  %v3001_v59 = vld [vmem:[#allocation30_spill] sm:$0xff] }
 0x123   :  { %1704 = vtanh.f32 %v2234_v49 }
 0x130   :  { %v1705_v55 = vpop.eup %1704 }
 0x131   :  { %v2237_v61 = vmul.f32 %v1705_v55, %v282_v60  ;;  %v3004_v60 = vld [vmem:[#allocation31_spill] sm:$0xff]  ;;  %v3005_v55 = vmov 0.0  }
 0x133   :  { %364 = vmatmul.mubr.f32.vlgmr.msra.gmra.mxu0 %v2237_v61  ;;  %435 = vmatmul.mubr.f32.vlgmr.msra.gmra.mxu1 %v2237_v61 }
 0x134   :  { %472 = vmatpush1.msra.mxu0 %v1974_v2  ;;  %543 = vmatpush1.msra.mxu1 %v1983_v6 }
 0x135   :  { %473 = vmatprep.subr.mxu0 %v1976_v3  ;;  %544 = vmatprep.subr.mxu1 %v1989_v8 }
 0x136   :  { %474 = vmatpush1.msra.mxu0 %v1981_v5  ;;  %545 = vmatpush1.msra.mxu1 %v1995_v10 }
 0x137   :  { %475 = vmatprep.subr.mxu0 %v1987_v7  ;;  %546 = vmatprep.subr.mxu1 %v1997_v11 }
 0x138   :  { %476 = vmatpush1.msra.mxu0 %v1993_v9  ;;  %547 = vmatpush1.msra.mxu1 %v2003_v13 }
 0x139   :  { %477 = vmatprep.subr.mxu0 %v2001_v12  ;;  %548 = vmatprep.subr.mxu1 %v2009_v15 }
 0x13a   :  { %478 = vmatpush1.msra.mxu0 %v2007_v14  ;;  %549 = vmatpush1.msra.mxu1 %v2015_v17 }
 0x13b   :  { %479 = vmatprep.subr.mxu0 %v2013_v16  ;;  %550 = vmatprep.subr.mxu1 %v2021_v19 }
 0x13c   :  { %480 = vmatpush1.msra.mxu0 %v2019_v18  ;;  %551 = vmatpush1.msra.mxu1 %v2027_v21 }
 0x13d   :  { %481 = vmatprep.subr.mxu0 %v2025_v20  ;;  %552 = vmatprep.subr.mxu1 %v2033_v23 }
 0x13e   :  { %482 = vmatpush1.msra.mxu0 %v2031_v22  ;;  %553 = vmatpush1.msra.mxu1 %v2039_v25 }
 0x13f   :  { %483 = vmatprep.subr.mxu0 %v2037_v24  ;;  %554 = vmatprep.subr.mxu1 %v2045_v27 }
 0x140   :  { %484 = vmatpush1.msra.mxu0 %v2043_v26  ;;  %555 = vmatpush1.msra.mxu1 %v2051_v29 }
 0x141   :  { %485 = vmatprep.subr.mxu0 %v2049_v28  ;;  %556 = vmatprep.subr.mxu1 %v2057_v31 }
 0x142   :  { %486 = vmatpush1.msra.mxu0 %v2055_v30  ;;  %557 = vmatpush1.msra.mxu1 %v2063_v33 }
 0x143   :  { %487 = vmatprep.subr.mxu0 %v2061_v32  ;;  %558 = vmatprep.subr.mxu1 %v2069_v35 }
 0x144   :  { %488 = vmatpush1.msra.mxu0 %v2067_v34  ;;  %559 = vmatpush1.msra.mxu1 %v2075_v37 }
 0x145   :  { %489 = vmatprep.subr.mxu0 %v2073_v36  ;;  %560 = vmatprep.subr.mxu1 %v2081_v39 }
 0x146   :  { %490 = vmatpush1.msra.mxu0 %v2079_v38  ;;  %561 = vmatpush1.msra.mxu1 %v2087_v41 }
 0x147   :  { %491 = vmatprep.subr.mxu0 %v2085_v40  ;;  %562 = vmatprep.subr.mxu1 %v2093_v43 }
 0x148   :  { %492 = vmatpush1.msra.mxu0 %v2091_v42  ;;  %563 = vmatpush1.msra.mxu1 %v2099_v45 }
 0x149   :  { %493 = vmatprep.subr.mxu0 %v2097_v44  ;;  %564 = vmatprep.subr.mxu1 %v2988_v0 }
 0x14a   :  { %494 = vmatpush1.msra.mxu0 %v2103_v46  ;;  %565 = vmatpush1.msra.mxu1 %v2989_v1 }
 0x14b   :  { %495 = vmatprep.subr.mxu0 %v2990_v4  ;;  %566 = vmatprep.subr.mxu1 %v2991_v48 }
 0x14c   :  { %496 = vmatpush1.msra.mxu0 %v2992_v50  ;;  %567 = vmatpush1.msra.mxu1 %v2993_v51  ;;  %v298_v51 = vld [vmem:[#allocation2 + $0x38] sm:$0xff] }
 0x14d   :  { %497 = vmatprep.subr.mxu0 %v2994_v52  ;;  %568 = vmatprep.subr.mxu1 %v2995_v53  ;;  %v3006_v53 = vld [vmem:[#allocation33_spill] sm:$0xff] }
 0x14e   :  { %498 = vmatpush1.msra.mxu0 %v2996_v56  ;;  %569 = vmatpush1.msra.mxu1 %v2997_v57  ;;  %v3007_v57 = vld [vmem:[#allocation12_spill] sm:$0xff] }
 0x14f   :  { %499 = vmatprep.subr.mxu0 %v2998_v62  ;;  %570 = vmatprep.subr.mxu1 %v2999_v63  ;;  %v3008_v62 = vld [vmem:[#allocation13_spill] sm:$0xff]  ;;  %v295_v63 = vld [vmem:[#allocation2 + $0x20] sm:$0xff] }
 0x150   :  { %500 = vmatpush1.msra.mxu0 %v3000_v58  ;;  %571 = vmatpush1.msra.mxu1 %v3001_v59  ;;  %v296_v59 = vld [vmem:[#allocation2 + $0x28] sm:$0xff] }
 0x151   :  { %501 = vmatprep.subr.mxu0 %v3002_v47  ;;  %572 = vmatprep.subr.mxu1 %v3003_v54 }
 0x152   :  { %502 = vmatpush1.msra.mxu0 %v3004_v60  ;;  %535 = vmatprep.mubr.f32.mxu0 %v3005_v55 }
 0x153   :  { %573 = vmatpush1.msra.mxu1 %v3006_v53  ;;  %606 = vmatprep.mubr.f32.mxu1 %v3005_v55  ;;  %v297_v53 = vld [vmem:[#allocation2 + $0x30] sm:$0xff] }
 0x154   :  { %643 = vmatprep.subr.mxu0 %v3007_v57  ;;  %714 = vmatprep.subr.mxu1 %v3008_v62 }
 0x1f3   :  { %v365_v58 = vpop.f32.mrf.mxu0  ;;  %v436_v56 = vpop.f32.mrf.mxu1 }
 0x1f4   :  { %v441_v52 = vadd.f32 %v365_v58, %v295_v63  ;;  %v443_v48 = vadd.f32 %v436_v56, %v297_v53 }
 0x1f5   :  { %v367_v47 = vpop.f32.mrf.mxu0  ;;  %v438_v54 = vpop.f32.mrf.mxu1 }
 0x1f6   :  { %1706 = vtanh.f32 %v441_v52  ;;  %v442_v60 = vadd.f32 %v367_v47, %v296_v59  ;;  %v444_v50 = vadd.f32 %v438_v54, %v298_v51 }
 0x1f8   :  { %1708 = vtanh.f32 %v442_v60 }
 0x1f9   :  { %1710 = vtanh.f32 %v444_v50  ;;  %v288_v50 = vrot.slane %v2237_v61, 4 }
 0x1fa   :  { %1712 = vtanh.f32 %v443_v48 }
 0x1fb   :  { %v289_v53 = vmax.f32 %v2237_v61, %v288_v50  ;;  %v3015_v50 = vld [vmem:[#allocation17_spill] sm:$0xff] }
 0x1fd   :  { %v290_v48 = vrot.slane %v289_v53, 2 }
 0x203   :  { %v1707_v55 = vpop.eup %1706 }
 0x204   :  { %v449_v4 = vmul.f32 0.5, %v1707_v55  ;;  %v3011_v55 = vld [vmem:[#allocation14_spill] sm:$0xff] }
 0x205   :  { %v1709_v57 = vpop.eup %1708 }
 0x206   :  { %v450_v1 = vadd.f32 0.5, %v449_v4  ;;  %v451_v62 = vmul.f32 0.5, %v1709_v57  ;;  %v1711_v0 = vpop.eup %1710 }
 0x207   :  { %v1713_v52 = vpop.eup %1712 }
 0x208   :  { %v452_v46 = vadd.f32 0.5, %v451_v62  ;;  %v456_v58 = vmul.f32 %v1711_v0, %v450_v1  ;;  %v453_v51 = vmul.f32 0.5, %v1713_v52  ;;  %v3014_v52 = vld [vmem:[#allocation18_spill] sm:$0xff] }
 0x20a   :  { %v455_v63 = vmul.f32 %v452_v46, %v2234_v49  ;;  %v454_v56 = vadd.f32 0.5, %v453_v51  ;;  %v291_v49 = vmax.f32 %v289_v53, %v290_v48  ;;  %v3016_v51 = vld [vmem:[#allocation20_spill] sm:$0xff]  ;;  %v3017_v53 = vld [vmem:[#allocation19_spill] sm:$0xff] }
 0x20b   :  { %v3021_v48 = vld [vmem:[#allocation23_spill] sm:$0xff] }
 0x20c   :  { %v2308_v44 = vadd.f32 %v456_v58, %v455_v63  ;;  %v292_v0 = vrot.slane %v291_v49, 1  ;;  %v3012_v63 = vld [vmem:[#allocation16_spill] sm:$0xff]  ;;  %v3013_v58 = vld [vmem:[#allocation15_spill] sm:$0xff] }
 0x20e   :  { %1714 = vtanh.f32 %v2308_v44  ;;  %v2333_v47 = vmax.f32 %v291_v49, %v292_v0  ;;  %v3024_v49 = vld [vmem:[#allocation28_spill] sm:$0xff]  ;;  %v3026_v0 = vld [vmem:[#allocation30_spill] sm:$0xff] }
 0x210   :  { %3009 = vst [vmem:[#allocation34_spill] sm:$0xff] %v2333_v47 }
 0x21b   :  { %v1715_v59 = vpop.eup %1714 }
 0x21c   :  { %v459_v4 = vmul.f32 %v1715_v59, %v454_v56  ;;  %v3018_v56 = vld [vmem:[#allocation22_spill] sm:$0xff]  ;;  %v3019_v59 = vld [vmem:[#allocation21_spill] sm:$0xff] }
 0x21e   :  { %v460_v57 = vrot.slane %v459_v4, 4  ;;  %536 = vmatmul.mubr.f32.vlgmr.msra.gmra.mxu0 %v459_v4  ;;  %607 = vmatmul.mubr.f32.vlgmr.msra.gmra.mxu1 %v459_v4 }
 0x21f   :  { %644 = vmatpush1.msra.mxu0 %v1974_v2  ;;  %715 = vmatpush1.msra.mxu1 %v1983_v6 }
 0x220   :  { %v461_v46 = vmax.f32 %v459_v4, %v460_v57  ;;  %645 = vmatprep.subr.mxu0 %v1976_v3  ;;  %716 = vmatprep.subr.mxu1 %v1989_v8  ;;  %v3020_v4 = vld [vmem:[#allocation24_spill] sm:$0xff]  ;;  %v3022_v57 = vld [vmem:[#allocation26_spill] sm:$0xff] }
 0x221   :  { %646 = vmatpush1.msra.mxu0 %v1981_v5  ;;  %717 = vmatpush1.msra.mxu1 %v1995_v10 }
 0x222   :  { %647 = vmatprep.subr.mxu0 %v1987_v7  ;;  %718 = vmatprep.subr.mxu1 %v1997_v11  ;;  %v462_v61 = vrot.slane %v461_v46, 2 }
 0x223   :  { %648 = vmatpush1.msra.mxu0 %v1993_v9  ;;  %719 = vmatpush1.msra.mxu1 %v2003_v13 }
 0x224   :  { %649 = vmatprep.subr.mxu0 %v2001_v12  ;;  %720 = vmatprep.subr.mxu1 %v2009_v15  ;;  %v463_v1 = vmax.f32 %v461_v46, %v462_v61  ;;  %v3023_v46 = vld [vmem:[#allocation25_spill] sm:$0xff]  ;;  %v3025_v61 = vld [vmem:[#allocation27_spill] sm:$0xff] }
 0x225   :  { %650 = vmatpush1.msra.mxu0 %v2007_v14  ;;  %721 = vmatpush1.msra.mxu1 %v2015_v17 }
 0x226   :  { %651 = vmatprep.subr.mxu0 %v2013_v16  ;;  %722 = vmatprep.subr.mxu1 %v2021_v19  ;;  %v464_v62 = vrot.slane %v463_v1, 1 }
 0x227   :  { %652 = vmatpush1.msra.mxu0 %v2019_v18  ;;  %723 = vmatpush1.msra.mxu1 %v2027_v21 }
 0x228   :  { %653 = vmatprep.subr.mxu0 %v2025_v20  ;;  %724 = vmatprep.subr.mxu1 %v2033_v23  ;;  %v2335_v54 = vmax.f32 %v463_v1, %v464_v62  ;;  %v3027_v1 = vld [vmem:[#allocation29_spill] sm:$0xff]  ;;  %v3028_v62 = vld [vmem:[#allocation32_spill] sm:$0xff] }
 0x229   :  { %654 = vmatpush1.msra.mxu0 %v2031_v22  ;;  %725 = vmatpush1.msra.mxu1 %v2039_v25 }
 0x22a   :  { %3010 = vst [vmem:[#allocation35_spill] sm:$0xff] %v2335_v54  ;;  %655 = vmatprep.subr.mxu0 %v2037_v24  ;;  %726 = vmatprep.subr.mxu1 %v2045_v27  ;;  %v2344_v60 = vsel %vm1498_vm0, %v2333_v47, %v2335_v54  ;;  %v3029_v47 = vld [vmem:[#allocation31_spill] sm:$0xff]  ;;  %v3030_v54 = vmov 0.0  }
 0x22b   :  { %656 = vmatpush1.msra.mxu0 %v2043_v26  ;;  %727 = vmatpush1.msra.mxu1 %v2051_v29 }
 0x22c   :  { %657 = vmatprep.subr.mxu0 %v2049_v28  ;;  %728 = vmatprep.subr.mxu1 %v2057_v31 }
 0x22d   :  { %658 = vmatpush1.msra.mxu0 %v2055_v30  ;;  %729 = vmatpush1.msra.mxu1 %v2063_v33 }
 0x22e   :  { %659 = vmatprep.subr.mxu0 %v2061_v32  ;;  %730 = vmatprep.subr.mxu1 %v2069_v35 }
 0x22f   :  { %660 = vmatpush1.msra.mxu0 %v2067_v34  ;;  %731 = vmatpush1.msra.mxu1 %v2075_v37 }
 0x230   :  { %661 = vmatprep.subr.mxu0 %v2073_v36  ;;  %732 = vmatprep.subr.mxu1 %v2081_v39 }
 0x231   :  { %662 = vmatpush1.msra.mxu0 %v2079_v38  ;;  %733 = vmatpush1.msra.mxu1 %v2087_v41 }
 0x232   :  { %663 = vmatprep.subr.mxu0 %v2085_v40  ;;  %734 = vmatprep.subr.mxu1 %v2093_v43 }
 0x233   :  { %664 = vmatpush1.msra.mxu0 %v2091_v42  ;;  %735 = vmatpush1.msra.mxu1 %v2099_v45 }
 0x234   :  { %665 = vmatprep.subr.mxu0 %v3011_v55  ;;  %736 = vmatprep.subr.mxu1 %v3012_v63 }
 0x235   :  { %666 = vmatpush1.msra.mxu0 %v3013_v58  ;;  %737 = vmatpush1.msra.mxu1 %v3014_v52 }
 0x236   :  { %667 = vmatprep.subr.mxu0 %v3015_v50  ;;  %738 = vmatprep.subr.mxu1 %v3016_v51 }
 0x237   :  { %668 = vmatpush1.msra.mxu0 %v3017_v53  ;;  %739 = vmatpush1.msra.mxu1 %v3018_v56  ;;  %v470_v56 = vld [vmem:[#allocation2 + $0x58] sm:$0xff] }
 0x238   :  { %669 = vmatprep.subr.mxu0 %v3019_v59  ;;  %740 = vmatprep.subr.mxu1 %v3020_v4  ;;  %v3031_v4 = vld [vmem:[#allocation33_spill] sm:$0xff] }
 0x239   :  { %670 = vmatpush1.msra.mxu0 %v3021_v48  ;;  %741 = vmatpush1.msra.mxu1 %v3022_v57  ;;  %v3032_v57 = vld [vmem:[#allocation12_spill] sm:$0xff] }
 0x23a   :  { %671 = vmatprep.subr.mxu0 %v3023_v46  ;;  %742 = vmatprep.subr.mxu1 %v3024_v49  ;;  %v3033_v46 = vld [vmem:[#allocation13_spill] sm:$0xff]  ;;  %v467_v49 = vld [vmem:[#allocation2 + $0x40] sm:$0xff] }
 0x23b   :  { %672 = vmatpush1.msra.mxu0 %v3025_v61  ;;  %743 = vmatpush1.msra.mxu1 %v3026_v0  ;;  %v468_v0 = vld [vmem:[#allocation2 + $0x48] sm:$0xff] }
 0x23c   :  { %673 = vmatprep.subr.mxu0 %v3027_v1  ;;  %744 = vmatprep.subr.mxu1 %v3028_v62 }
 0x23d   :  { %674 = vmatpush1.msra.mxu0 %v3029_v47  ;;  %707 = vmatprep.mubr.f32.mxu0 %v3030_v54 }
 0x23e   :  { %745 = vmatpush1.msra.mxu1 %v3031_v4  ;;  %778 = vmatprep.mubr.f32.mxu1 %v3030_v54  ;;  %v469_v4 = vld [vmem:[#allocation2 + $0x50] sm:$0xff] }
 0x23f   :  { %815 = vmatprep.subr.mxu0 %v3032_v57  ;;  %886 = vmatprep.subr.mxu1 %v3033_v46 }
 0x2de   :  { %v537_v61 = vpop.f32.mrf.mxu0  ;;  %v608_v48 = vpop.f32.mrf.mxu1 }
 0x2df   :  { %v613_v59 = vadd.f32 %v537_v61, %v467_v49  ;;  %v615_v51 = vadd.f32 %v608_v48, %v469_v4 }
 0x2e0   :  { %v539_v1 = vpop.f32.mrf.mxu0  ;;  %v610_v62 = vpop.f32.mrf.mxu1 }
 0x2e1   :  { %1716 = vtanh.f32 %v613_v59  ;;  %v614_v47 = vadd.f32 %v539_v1, %v468_v0  ;;  %v616_v53 = vadd.f32 %v610_v62, %v470_v56 }
 0x2e3   :  { %1718 = vtanh.f32 %v614_v47 }
 0x2e4   :  { %1720 = vtanh.f32 %v616_v53 }
 0x2e5   :  { %1722 = vtanh.f32 %v615_v51 }
 0x2ee   :  { %v1717_v54 = vpop.eup %1716 }
 0x2ef   :  { %v621_v50 = vmul.f32 0.5, %v1717_v54 }
 0x2f0   :  { %v1719_v57 = vpop.eup %1718 }
 0x2f1   :  { %v622_v52 = vadd.f32 0.5, %v621_v50  ;;  %v623_v46 = vmul.f32 0.5, %v1719_v57  ;;  %v1721_v63 = vpop.eup %1720 }
 0x2f2   :  { %v1723_v47 = vpop.eup %1722 }
 0x2f3   :  { %v624_v58 = vadd.f32 0.5, %v623_v46  ;;  %v628_v61 = vmul.f32 %v1721_v63, %v622_v52  ;;  %v625_v56 = vmul.f32 0.5, %v1723_v47  ;;  %v2473_v47 = vld [vmem:[#allocation5 + $0x1e0] sm:$0xff] }
 0x2f5   :  { %v627_v49 = vmul.f32 %v624_v58, %v2308_v44  ;;  %v626_v53 = vadd.f32 0.5, %v625_v56  ;;  %v2476_v56 = vld [vmem:[#allocation5 + $0x1f0] sm:$0xff] }
 0x2f7   :  { %v2389_v55 = vadd.f32 %v628_v61, %v627_v49 }
 0x2f9   :  { %1724 = vtanh.f32 %v2389_v55 }
 0x306   :  { %v1725_v59 = vpop.eup %1724 }
 0x307   :  { %v631_v4 = vmul.f32 %v1725_v59, %v626_v53  ;;  %v2479_v53 = vld [vmem:[#allocation5 + $0x1c8] sm:$0xff]  ;;  %v2482_v59 = vld [vmem:[#allocation5 + $0x1d8] sm:$0xff] }
 0x309   :  { %v632_v48 = vrot.slane %v631_v4, 4  ;;  %708 = vmatmul.mubr.f32.vlgmr.msra.gmra.mxu0 %v631_v4  ;;  %779 = vmatmul.mubr.f32.vlgmr.msra.gmra.mxu1 %v631_v4 }
 0x30a   :  { %816 = vmatpush1.msra.mxu0 %v1974_v2  ;;  %887 = vmatpush1.msra.mxu1 %v1983_v6 }
 0x30b   :  { %v633_v54 = vmax.f32 %v631_v4, %v632_v48  ;;  %817 = vmatprep.subr.mxu0 %v1976_v3  ;;  %888 = vmatprep.subr.mxu1 %v1989_v8  ;;  %v3036_v8 = vld [vmem:[#allocation16_spill] sm:$0xff]  ;;  %v2485_v4 = vld [vmem:[#allocation5 + $0x1c0] sm:$0xff]  ;;  %v2488_v48 = vld [vmem:[#allocation5 + $0x1d0] sm:$0xff] }
 0x30c   :  { %818 = vmatpush1.msra.mxu0 %v1981_v5  ;;  %889 = vmatpush1.msra.mxu1 %v1995_v10  ;;  %v3038_v10 = vld [vmem:[#allocation18_spill] sm:$0xff] }
 0x30d   :  { %v634_v44 = vrot.slane %v633_v54, 2  ;;  %819 = vmatprep.subr.mxu0 %v1987_v7  ;;  %890 = vmatprep.subr.mxu1 %v1997_v11  ;;  %v3035_v7 = vld [vmem:[#allocation14_spill] sm:$0xff]  ;;  %v3039_v11 = vld [vmem:[#allocation17_spill] sm:$0xff] }
 0x30e   :  { %820 = vmatpush1.msra.mxu0 %v1993_v9  ;;  %891 = vmatpush1.msra.mxu1 %v2003_v13  ;;  %v3037_v9 = vld [vmem:[#allocation15_spill] sm:$0xff] }
 0x30f   :  { %821 = vmatprep.subr.mxu0 %v2001_v12  ;;  %892 = vmatprep.subr.mxu1 %v2009_v15  ;;  %v635_v2 = vmax.f32 %v633_v54, %v634_v44  ;;  %v3040_v12 = vld [vmem:[#allocation20_spill] sm:$0xff]  ;;  %v3041_v13 = vld [vmem:[#allocation19_spill] sm:$0xff]  ;;  %v3043_v15 = vld [vmem:[#allocation21_spill] sm:$0xff] }
 0x310   :  { %822 = vmatpush1.msra.mxu0 %v2007_v14  ;;  %893 = vmatpush1.msra.mxu1 %v2015_v17  ;;  %v3042_v14 = vld [vmem:[#allocation22_spill] sm:$0xff]  ;;  %v3045_v17 = vld [vmem:[#allocation23_spill] sm:$0xff]  ;;  %v2491_v44 = vld [vmem:[#allocation5 + $0x1a8] sm:$0xff] }
 0x311   :  { %823 = vmatprep.subr.mxu0 %v2013_v16  ;;  %894 = vmatprep.subr.mxu1 %v2021_v19  ;;  %v636_v3 = vrot.slane %v635_v2, 1  ;;  %v3044_v16 = vld [vmem:[#allocation24_spill] sm:$0xff]  ;;  %v3047_v19 = vld [vmem:[#allocation25_spill] sm:$0xff] }
 0x312   :  { %824 = vmatpush1.msra.mxu0 %v2019_v18  ;;  %895 = vmatpush1.msra.mxu1 %v2027_v21  ;;  %v3046_v18 = vld [vmem:[#allocation26_spill] sm:$0xff]  ;;  %v3049_v21 = vld [vmem:[#allocation27_spill] sm:$0xff] }
 0x313   :  { %825 = vmatprep.subr.mxu0 %v2025_v20  ;;  %896 = vmatprep.subr.mxu1 %v2033_v23  ;;  %v2412_v5 = vmax.f32 %v635_v2, %v636_v3  ;;  %v3048_v20 = vld [vmem:[#allocation28_spill] sm:$0xff]  ;;  %v3051_v23 = vld [vmem:[#allocation29_spill] sm:$0xff]  ;;  %v2494_v2 = vld [vmem:[#allocation5 + $0x1b8] sm:$0xff] }
 0x314   :  { %826 = vmatpush1.msra.mxu0 %v2031_v22  ;;  %897 = vmatpush1.msra.mxu1 %v2039_v25  ;;  %v3050_v22 = vld [vmem:[#allocation30_spill] sm:$0xff]  ;;  %v3053_v25 = vld [vmem:[#allocation31_spill] sm:$0xff] }
 0x315   :  { %3034 = vst [vmem:[#allocation12_spill] sm:$0xff] %v2412_v5  ;;  %827 = vmatprep.subr.mxu0 %v2037_v24  ;;  %898 = vmatprep.subr.mxu1 %v2045_v27  ;;  %v2421_v6 = vsel %vm1500_vm1, %v2344_v60, %v2412_v5  ;;  %v3052_v24 = vld [vmem:[#allocation32_spill] sm:$0xff]  ;;  %v3055_v27 = vld [vmem:[#allocation33_spill] sm:$0xff]  ;;  %v2497_v3 = vld [vmem:[#allocation5 + $0x1a0] sm:$0xff] }
 0x316   :  { %828 = vmatpush1.msra.mxu0 %v2043_v26  ;;  %899 = vmatpush1.msra.mxu1 %v2051_v29  ;;  %v3054_v26 = vmov 0.0   ;;  %v2466_v29 = vld [vmem:[#allocation5 + $0x1f8] sm:$0xff] }
 0x317   :  { %829 = vmatprep.subr.mxu0 %v2049_v28  ;;  %900 = vmatprep.subr.mxu1 %v2057_v31  ;;  %v2463_v28 = vld [vmem:[#allocation5 + $0x1e8] sm:$0xff]  ;;  %3057 = vst [vmem:[#allocation14_spill] sm:$0xff] %v2466_v29  ;;  %v2621_v5 = vld [vmem:[#allocation5 + $0x78] sm:$0xff] }
 0x318   :  { %830 = vmatpush1.msra.mxu0 %v2055_v30  ;;  %901 = vmatpush1.msra.mxu1 %v2063_v33  ;;  %3056 = vst [vmem:[#allocation13_spill] sm:$0xff] %v2463_v28  ;;  %v639_v30 = vld [vmem:[#allocation2 + $0x60] sm:$0xff]  ;;  %v640_v33 = vld [vmem:[#allocation2 + $0x68] sm:$0xff]  ;;  %3064 = vst [vmem:[#allocation22_spill] sm:$0xff] %v2621_v5 }
 0x319   :  { %831 = vmatprep.subr.mxu0 %v2061_v32  ;;  %902 = vmatprep.subr.mxu1 %v2069_v35 }
 0x31a   :  { %832 = vmatpush1.msra.mxu0 %v2067_v34  ;;  %903 = vmatpush1.msra.mxu1 %v2075_v37 }
 0x31b   :  { %833 = vmatprep.subr.mxu0 %v2073_v36  ;;  %904 = vmatprep.subr.mxu1 %v2081_v39  ;;  %v642_v36 = vld [vmem:[#allocation2 + $0x78] sm:$0xff] }
 0x31c   :  { %834 = vmatpush1.msra.mxu0 %v2079_v38  ;;  %905 = vmatpush1.msra.mxu1 %v2087_v41 }
 0x31d   :  { %835 = vmatprep.subr.mxu0 %v2085_v40  ;;  %906 = vmatprep.subr.mxu1 %v2093_v43  ;;  %v641_v40 = vld [vmem:[#allocation2 + $0x70] sm:$0xff] }
 0x31e   :  { %836 = vmatpush1.msra.mxu0 %v2091_v42  ;;  %907 = vmatpush1.msra.mxu1 %v2099_v45 }
 0x31f   :  { %837 = vmatprep.subr.mxu0 %v3035_v7  ;;  %908 = vmatprep.subr.mxu1 %v3036_v8  ;;  %v2500_v7 = vld [vmem:[#allocation5 + $0x1b0] sm:$0xff] }
 0x320   :  { %838 = vmatpush1.msra.mxu0 %v3037_v9  ;;  %909 = vmatpush1.msra.mxu1 %v3038_v10  ;;  %v2503_v9 = vld [vmem:[#allocation5 + $0x188] sm:$0xff]  ;;  %v2506_v10 = vld [vmem:[#allocation5 + $0x198] sm:$0xff] }
 0x321   :  { %839 = vmatprep.subr.mxu0 %v3039_v11  ;;  %910 = vmatprep.subr.mxu1 %v3040_v12  ;;  %v2509_v11 = vld [vmem:[#allocation5 + $0x180] sm:$0xff]  ;;  %v2512_v12 = vld [vmem:[#allocation5 + $0x190] sm:$0xff] }
 0x322   :  { %840 = vmatpush1.msra.mxu0 %v3041_v13  ;;  %911 = vmatpush1.msra.mxu1 %v3042_v14  ;;  %v2515_v13 = vld [vmem:[#allocation5 + $0x168] sm:$0xff]  ;;  %v2518_v14 = vld [vmem:[#allocation5 + $0x178] sm:$0xff] }
 0x323   :  { %841 = vmatprep.subr.mxu0 %v3043_v15  ;;  %912 = vmatprep.subr.mxu1 %v3044_v16 }
 0x324   :  { %842 = vmatpush1.msra.mxu0 %v3045_v17  ;;  %913 = vmatpush1.msra.mxu1 %v3046_v18  ;;  %v2521_v17 = vld [vmem:[#allocation5 + $0x160] sm:$0xff] }
 0x325   :  { %843 = vmatprep.subr.mxu0 %v3047_v19  ;;  %914 = vmatprep.subr.mxu1 %v3048_v20 }
 0x326   :  { %844 = vmatpush1.msra.mxu0 %v3049_v21  ;;  %915 = vmatpush1.msra.mxu1 %v3050_v22 }
 0x327   :  { %845 = vmatprep.subr.mxu0 %v3051_v23  ;;  %916 = vmatprep.subr.mxu1 %v3052_v24 }
 0x328   :  { %846 = vmatpush1.msra.mxu0 %v3053_v25  ;;  %879 = vmatprep.mubr.f32.mxu0 %v3054_v26 }
 0x329   :  { %917 = vmatpush1.msra.mxu1 %v3055_v27  ;;  %950 = vmatprep.mubr.f32.mxu1 %v3054_v26 }
 0x32a   :  { %987 = vmatprep.subr.mxu0 %v2463_v28  ;;  %1058 = vmatprep.subr.mxu1 %v2466_v29 }
 0x3c9   :  { %v709_v31 = vpop.f32.mrf.mxu0  ;;  %v780_v32 = vpop.f32.mrf.mxu1 }
 0x3ca   :  { %v785_v34 = vadd.f32 %v709_v31, %v639_v30  ;;  %v787_v41 = vadd.f32 %v780_v32, %v641_v40  ;;  %v2524_v30 = vld [vmem:[#allocation5 + $0x170] sm:$0xff]  ;;  %v2527_v31 = vld [vmem:[#allocation5 + $0x148] sm:$0xff]  ;;  %v2530_v32 = vld [vmem:[#allocation5 + $0x158] sm:$0xff] }
 0x3cb   :  { %v711_v35 = vpop.f32.mrf.mxu0  ;;  %v782_v37 = vpop.f32.mrf.mxu1  ;;  %v2555_v40 = vld [vmem:[#allocation5 + $0x130] sm:$0xff] }
 0x3cc   :  { %1726 = vtanh.f32 %v785_v34  ;;  %v786_v38 = vadd.f32 %v711_v35, %v640_v33  ;;  %v788_v39 = vadd.f32 %v782_v37, %v642_v36  ;;  %v2535_v34 = vld [vmem:[#allocation5 + $0x140] sm:$0xff]  ;;  %v2538_v35 = vld [vmem:[#allocation5 + $0x150] sm:$0xff]  ;;  %v2541_v36 = vld [vmem:[#allocation5 + $0x128] sm:$0xff] }
 0x3cd   :  { %v2544_v37 = vld [vmem:[#allocation5 + $0x138] sm:$0xff] }
 0x3ce   :  { %1728 = vtanh.f32 %v786_v38 }
 0x3cf   :  { %1730 = vtanh.f32 %v788_v39  ;;  %v2552_v39 = vld [vmem:[#allocation5 + $0x120] sm:$0xff] }
 0x3d0   :  { %1732 = vtanh.f32 %v787_v41  ;;  %v2558_v41 = vld [vmem:[#allocation5 + $0x108] sm:$0xff] }
 0x3d9   :  { %v1727_v42 = vpop.eup %1726 }
 0x3da   :  { %v793_v43 = vmul.f32 0.5, %v1727_v42  ;;  %v2561_v42 = vld [vmem:[#allocation5 + $0x118] sm:$0xff] }
 0x3db   :  { %v1729_v45 = vpop.eup %1728 }
 0x3dc   :  { %v794_v60 = vadd.f32 0.5, %v793_v43  ;;  %v795_v63 = vmul.f32 0.5, %v1729_v45  ;;  %v1731_v52 = vpop.eup %1730  ;;  %v2564_v43 = vld [vmem:[#allocation5 + $0x100] sm:$0xff]  ;;  %v2570_v45 = vld [vmem:[#allocation5 + $0xe8] sm:$0xff] }
 0x3dd   :  { %v1733_v1 = vpop.eup %1732 }
 0x3de   :  { %v796_v58 = vadd.f32 0.5, %v795_v63  ;;  %v800_v51 = vmul.f32 %v1731_v52, %v794_v60  ;;  %v797_v62 = vmul.f32 0.5, %v1733_v1  ;;  %v2573_v60 = vld [vmem:[#allocation5 + $0xf8] sm:$0xff]  ;;  %v2576_v63 = vld [vmem:[#allocation5 + $0xe0] sm:$0xff]  ;;  %v2582_v52 = vld [vmem:[#allocation5 + $0xc8] sm:$0xff] }
 0x3df   :  { %v2591_v1 = vld [vmem:[#allocation5 + $0xd0] sm:$0xff] }
 0x3e0   :  { %v799_v50 = vmul.f32 %v796_v58, %v2389_v55  ;;  %v798_v57 = vadd.f32 0.5, %v797_v62  ;;  %v2579_v58 = vld [vmem:[#allocation5 + $0xf0] sm:$0xff]  ;;  %v2594_v62 = vld [vmem:[#allocation5 + $0xa8] sm:$0xff] }
 0x3e2   :  { %v2470_v0 = vadd.f32 %v800_v51, %v799_v50  ;;  %v2585_v50 = vld [vmem:[#allocation5 + $0xd8] sm:$0xff]  ;;  %v2588_v51 = vld [vmem:[#allocation5 + $0xc0] sm:$0xff] }
 0x3e4   :  { %1734 = vtanh.f32 %v2470_v0 }
 0x3f1   :  { %v1735_v46 = vpop.eup %1734 }
 0x3f2   :  { %v803_v49 = vmul.f32 %v1735_v46, %v798_v57  ;;  %v2597_v57 = vld [vmem:[#allocation5 + $0xb8] sm:$0xff]  ;;  %v2600_v46 = vld [vmem:[#allocation5 + $0xa0] sm:$0xff] }
 0x3f4   :  { %v804_v61 = vrot.slane %v803_v49, 4  ;;  %880 = vmatmul.mubr.f32.vlgmr.msra.gmra.mxu0 %v803_v49  ;;  %951 = vmatmul.mubr.f32.vlgmr.msra.gmra.mxu1 %v803_v49 }
 0x3f5   :  { %988 = vmatpush1.msra.mxu0 %v2473_v47  ;;  %1059 = vmatpush1.msra.mxu1 %v2476_v56 }
 0x3f6   :  { %v805_v55 = vmax.f32 %v803_v49, %v804_v61  ;;  %989 = vmatprep.subr.mxu0 %v2479_v53  ;;  %1060 = vmatprep.subr.mxu1 %v2482_v59  ;;  %v2603_v49 = vld [vmem:[#allocation5 + $0xb0] sm:$0xff]  ;;  %v2606_v61 = vld [vmem:[#allocation5 + $0x88] sm:$0xff] }
 0x3f7   :  { %990 = vmatpush1.msra.mxu0 %v2485_v4  ;;  %1061 = vmatpush1.msra.mxu1 %v2488_v48  ;;  %3059 = vst [vmem:[#allocation15_spill] sm:$0xff] %v2606_v61 }
 0x3f8   :  { %v806_v54 = vrot.slane %v805_v55, 2  ;;  %991 = vmatprep.subr.mxu0 %v2491_v44  ;;  %1062 = vmatprep.subr.mxu1 %v2494_v2 }
 0x3f9   :  { %992 = vmatpush1.msra.mxu0 %v2497_v3  ;;  %1063 = vmatpush1.msra.mxu1 %v2500_v7 }
 0x3fa   :  { %v807_v8 = vmax.f32 %v805_v55, %v806_v54  ;;  %993 = vmatprep.subr.mxu0 %v2503_v9  ;;  %1064 = vmatprep.subr.mxu1 %v2506_v10  ;;  %v2609_v55 = vld [vmem:[#allocation5 + $0x98] sm:$0xff]  ;;  %v2612_v54 = vld [vmem:[#allocation5 + $0x80] sm:$0xff] }
 0x3fb   :  { %994 = vmatpush1.msra.mxu0 %v2509_v11  ;;  %1065 = vmatpush1.msra.mxu1 %v2512_v12  ;;  %3060 = vst [vmem:[#allocation18_spill] sm:$0xff] %v2609_v55  ;;  %3061 = vst [vmem:[#allocation17_spill] sm:$0xff] %v2612_v54 }
 0x3fc   :  { %995 = vmatprep.subr.mxu0 %v2515_v13  ;;  %1066 = vmatprep.subr.mxu1 %v2518_v14  ;;  %v808_v15 = vrot.slane %v807_v8, 1 }
 0x3fd   :  { %996 = vmatpush1.msra.mxu0 %v2521_v17  ;;  %1067 = vmatpush1.msra.mxu1 %v2524_v30 }
 0x3fe   :  { %997 = vmatprep.subr.mxu0 %v2527_v31  ;;  %1068 = vmatprep.subr.mxu1 %v2530_v32  ;;  %v2533_v33 = vmax.f32 %v807_v8, %v808_v15  ;;  %v2615_v8 = vld [vmem:[#allocation5 + $0x90] sm:$0xff]  ;;  %v2618_v15 = vld [vmem:[#allocation5 + $0x68] sm:$0xff] }
 0x3ff   :  { %998 = vmatpush1.msra.mxu0 %v2535_v34  ;;  %1069 = vmatpush1.msra.mxu1 %v2538_v35  ;;  %3062 = vst [vmem:[#allocation20_spill] sm:$0xff] %v2615_v8  ;;  %3063 = vst [vmem:[#allocation19_spill] sm:$0xff] %v2618_v15 }
 0x400   :  { %3058 = vst [vmem:[#allocation16_spill] sm:$0xff] %v2533_v33  ;;  %999 = vmatprep.subr.mxu0 %v2541_v36  ;;  %1070 = vmatprep.subr.mxu1 %v2544_v37  ;;  %v2550_v38 = vsel %vm1502_vm2, %v2421_v6, %v2533_v33  ;;  %v2567_v6 = vld [vmem:[#allocation5 + $0x110] sm:$0xff]  ;;  %v2624_v33 = vld [vmem:[#allocation5 + $0x60] sm:$0xff] }
 0x401   :  { %1000 = vmatpush1.msra.mxu0 %v2552_v39  ;;  %1071 = vmatpush1.msra.mxu1 %v2555_v40  ;;  %3065 = vst [vmem:[#allocation21_spill] sm:$0xff] %v2624_v33 }
 0x402   :  { %1001 = vmatprep.subr.mxu0 %v2558_v41  ;;  %1072 = vmatprep.subr.mxu1 %v2561_v42 }
 0x403   :  { %1002 = vmatpush1.msra.mxu0 %v2564_v43  ;;  %1073 = vmatpush1.msra.mxu1 %v2567_v6 }
 0x404   :  { %1003 = vmatprep.subr.mxu0 %v2570_v45  ;;  %1074 = vmatprep.subr.mxu1 %v2573_v60 }
 0x405   :  { %1004 = vmatpush1.msra.mxu0 %v2576_v63  ;;  %1075 = vmatpush1.msra.mxu1 %v2579_v58 }
 0x406   :  { %1005 = vmatprep.subr.mxu0 %v2582_v52  ;;  %1076 = vmatprep.subr.mxu1 %v2585_v50 }
 0x407   :  { %1006 = vmatpush1.msra.mxu0 %v2588_v51  ;;  %1077 = vmatpush1.msra.mxu1 %v2591_v1 }
 0x408   :  { %1007 = vmatprep.subr.mxu0 %v2594_v62  ;;  %1078 = vmatprep.subr.mxu1 %v2597_v57 }
 0x409   :  { %1008 = vmatpush1.msra.mxu0 %v2600_v46  ;;  %1079 = vmatpush1.msra.mxu1 %v2603_v49 }
 0x40a   :  { %1009 = vmatprep.subr.mxu0 %v2606_v61  ;;  %1080 = vmatprep.subr.mxu1 %v2609_v55  ;;  %v2627_v55 = vld [vmem:[#allocation5 + $0x70] sm:$0xff] }
 0x40b   :  { %1010 = vmatpush1.msra.mxu0 %v2612_v54  ;;  %1081 = vmatpush1.msra.mxu1 %v2615_v8  ;;  %3066 = vst [vmem:[#allocation24_spill] sm:$0xff] %v2627_v55  ;;  %v2630_v54 = vld [vmem:[#allocation5 + $0x48] sm:$0xff]  ;;  %v2634_v8 = vld [vmem:[#allocation5 + $0x40] sm:$0xff] }
 0x40c   :  { %1011 = vmatprep.subr.mxu0 %v2618_v15  ;;  %1082 = vmatprep.subr.mxu1 %v2621_v5  ;;  %3067 = vst [vmem:[#allocation23_spill] sm:$0xff] %v2630_v54  ;;  %3068 = vst [vmem:[#allocation26_spill] sm:$0xff] %v2634_v8 }
 0x40d   :  { %1012 = vmatpush1.msra.mxu0 %v2624_v33  ;;  %1083 = vmatpush1.msra.mxu1 %v2627_v55 }
 0x40e   :  { %1013 = vmatprep.subr.mxu0 %v2630_v54  ;;  %1084 = vmatprep.subr.mxu1 %v3044_v16  ;;  %v811_v16 = vld [vmem:[#allocation2 + $0x80] sm:$0xff] }
 0x40f   :  { %1014 = vmatpush1.msra.mxu0 %v2634_v8  ;;  %1085 = vmatpush1.msra.mxu1 %v3046_v18 }
 0x410   :  { %1015 = vmatprep.subr.mxu0 %v3047_v19  ;;  %1086 = vmatprep.subr.mxu1 %v3048_v20  ;;  %v812_v20 = vld [vmem:[#allocation2 + $0x88] sm:$0xff] }
 0x411   :  { %1016 = vmatpush1.msra.mxu0 %v3049_v21  ;;  %1087 = vmatpush1.msra.mxu1 %v3050_v22 }
 0x412   :  { %1017 = vmatprep.subr.mxu0 %v3051_v23  ;;  %1088 = vmatprep.subr.mxu1 %v3052_v24  ;;  %v814_v23 = vld [vmem:[#allocation2 + $0x98] sm:$0xff] }
 0x413   :  { %1018 = vmatpush1.msra.mxu0 %v3053_v25  ;;  %1051 = vmatprep.mubr.f32.mxu0 %v3054_v26 }
 0x414   :  { %1089 = vmatpush1.msra.mxu1 %v3055_v27  ;;  %1122 = vmatprep.mubr.f32.mxu1 %v3054_v26  ;;  %v813_v27 = vld [vmem:[#allocation2 + $0x90] sm:$0xff] }
 0x415   :  { %1159 = vmatprep.subr.mxu0 %v2463_v28  ;;  %1230 = vmatprep.subr.mxu1 %v2466_v29 }
 0x4b4   :  { %v881_v18 = vpop.f32.mrf.mxu0  ;;  %v952_v19 = vpop.f32.mrf.mxu1 }
 0x4b5   :  { %v957_v21 = vadd.f32 %v881_v18, %v811_v16  ;;  %v959_v54 = vadd.f32 %v952_v19, %v813_v27  ;;  %v3076_v27 = vld [vmem:[#allocation21_spill] sm:$0xff] }
 0x4b6   :  { %v883_v22 = vpop.f32.mrf.mxu0  ;;  %v954_v24 = vpop.f32.mrf.mxu1 }
 0x4b7   :  { %1736 = vtanh.f32 %v957_v21  ;;  %v958_v25 = vadd.f32 %v883_v22, %v812_v20  ;;  %v960_v8 = vadd.f32 %v954_v24, %v814_v23  ;;  %v3074_v24 = vld [vmem:[#allocation19_spill] sm:$0xff] }
 0x4b9   :  { %1738 = vtanh.f32 %v958_v25  ;;  %v3075_v25 = vld [vmem:[#allocation22_spill] sm:$0xff] }
 0x4ba   :  { %1740 = vtanh.f32 %v960_v8 }
 0x4bb   :  { %1742 = vtanh.f32 %v959_v54  ;;  %v3072_v54 = vld [vmem:[#allocation17_spill] sm:$0xff] }
 0x4c4   :  { %v1737_v26 = vpop.eup %1736 }
 0x4c5   :  { %v965_v55 = vmul.f32 0.5, %v1737_v26 }
 0x4c6   :  { %v1739_v28 = vpop.eup %1738 }
 0x4c7   :  { %v966_v33 = vadd.f32 0.5, %v965_v55  ;;  %v967_v29 = vmul.f32 0.5, %v1739_v28  ;;  %v1741_v15 = vpop.eup %1740  ;;  %v3071_v55 = vld [vmem:[#allocation18_spill] sm:$0xff] }
 0x4c8   :  { %v1743_v20 = vpop.eup %1742 }
 0x4c9   :  { %v968_v5 = vadd.f32 0.5, %v967_v29  ;;  %v972_v18 = vmul.f32 %v1741_v15, %v966_v33  ;;  %v969_v21 = vmul.f32 0.5, %v1743_v20  ;;  %v3073_v15 = vld [vmem:[#allocation20_spill] sm:$0xff]  ;;  %v2712_v20 = vld [vmem:[#allocation5 + $0x58] sm:$0xff] }
 0x4ca   :  { %3079 = vst [vmem:[#allocation28_spill] sm:$0xff] %v2712_v20 }
 0x4cb   :  { %v971_v16 = vmul.f32 %v968_v5, %v2470_v0  ;;  %v970_v8 = vadd.f32 0.5, %v969_v21  ;;  %v3080_v21 = vld [vmem:[#allocation26_spill] sm:$0xff] }
 0x4cd   :  { %v2651_v61 = vadd.f32 %v972_v18, %v971_v16  ;;  %v3077_v16 = vld [vmem:[#allocation24_spill] sm:$0xff]  ;;  %v3078_v18 = vld [vmem:[#allocation23_spill] sm:$0xff] }
 0x4cf   :  { %1744 = vtanh.f32 %v2651_v61 }
 0x4dc   :  { %v1745_v22 = vpop.eup %1744 }
 0x4dd   :  { %v975_v19 = vmul.f32 %v1745_v22, %v970_v8  ;;  %v2716_v8 = vld [vmem:[#allocation5 + $0x50] sm:$0xff]  ;;  %v2719_v22 = vld [vmem:[#allocation5 + $0x28] sm:$0xff] }
 0x4de   :  { %3081 = vst [vmem:[#allocation27_spill] sm:$0xff] %v2716_v8  ;;  %3082 = vst [vmem:[#allocation30_spill] sm:$0xff] %v2719_v22 }
 0x4df   :  { %v976_v23 = vrot.slane %v975_v19, 4  ;;  %1052 = vmatmul.mubr.f32.vlgmr.msra.gmra.mxu0 %v975_v19  ;;  %1123 = vmatmul.mubr.f32.vlgmr.msra.gmra.mxu1 %v975_v19 }
 0x4e0   :  { %1160 = vmatpush1.msra.mxu0 %v2473_v47  ;;  %1231 = vmatpush1.msra.mxu1 %v2476_v56 }
 0x4e1   :  { %v977_v26 = vmax.f32 %v975_v19, %v976_v23  ;;  %1161 = vmatprep.subr.mxu0 %v2479_v53  ;;  %1232 = vmatprep.subr.mxu1 %v2482_v59  ;;  %v2722_v19 = vld [vmem:[#allocation5 + $0x38] sm:$0xff]  ;;  %v2725_v23 = vld [vmem:[#allocation5 + $0x20] sm:$0xff] }
 0x4e2   :  { %1162 = vmatpush1.msra.mxu0 %v2485_v4  ;;  %1233 = vmatpush1.msra.mxu1 %v2488_v48  ;;  %3083 = vst [vmem:[#allocation29_spill] sm:$0xff] %v2722_v19  ;;  %3084 = vst [vmem:[#allocation32_spill] sm:$0xff] %v2725_v23 }
 0x4e3   :  { %v978_v5 = vrot.slane %v977_v26, 2  ;;  %1163 = vmatprep.subr.mxu0 %v2491_v44  ;;  %1234 = vmatprep.subr.mxu1 %v2494_v2 }
 0x4e4   :  { %1164 = vmatpush1.msra.mxu0 %v2497_v3  ;;  %1235 = vmatpush1.msra.mxu1 %v2500_v7 }
 0x4e5   :  { %v979_v28 = vmax.f32 %v977_v26, %v978_v5  ;;  %1165 = vmatprep.subr.mxu0 %v2503_v9  ;;  %1236 = vmatprep.subr.mxu1 %v2506_v10  ;;  %v2728_v26 = vld [vmem:[#allocation5 + $0x30] sm:$0xff]  ;;  %v2731_v5 = vld [vmem:[#allocation5 + $0x8] sm:$0xff] }
 0x4e6   :  { %1166 = vmatpush1.msra.mxu0 %v2509_v11  ;;  %1237 = vmatpush1.msra.mxu1 %v2512_v12  ;;  %3085 = vst [vmem:[#allocation31_spill] sm:$0xff] %v2728_v26  ;;  %3086 = vst [vmem:[#allocation33_spill] sm:$0xff] %v2731_v5 }
 0x4e7   :  { %1167 = vmatprep.subr.mxu0 %v2515_v13  ;;  %1238 = vmatprep.subr.mxu1 %v2518_v14  ;;  %v980_v29 = vrot.slane %v979_v28, 1 }
 0x4e8   :  { %1168 = vmatpush1.msra.mxu0 %v2521_v17  ;;  %1239 = vmatpush1.msra.mxu1 %v2524_v30 }
 0x4e9   :  { %1169 = vmatprep.subr.mxu0 %v2527_v31  ;;  %1240 = vmatprep.subr.mxu1 %v2530_v32  ;;  %v2674_v0 = vmax.f32 %v979_v28, %v980_v29  ;;  %v2734_v28 = vld [vmem:[#allocation5 + $0x18] sm:$0xff]  ;;  %v2737_v29 = vld [vmem:[#allocation5] sm:$0xff] }
 0x4ea   :  { %1170 = vmatpush1.msra.mxu0 %v2535_v34  ;;  %1241 = vmatpush1.msra.mxu1 %v2538_v35  ;;  %3087 = vst [vmem:[#allocation36_spill] sm:$0xff] %v2734_v28  ;;  %3088 = vst [vmem:[#allocation37_spill] sm:$0xff] %v2737_v29 }
 0x4eb   :  { %3069 = vst [vmem:[#allocation25_spill] sm:$0xff] %v2674_v0  ;;  %1171 = vmatprep.subr.mxu0 %v2541_v36  ;;  %1242 = vmatprep.subr.mxu1 %v2544_v37  ;;  %v2683_v33 = vsel %vm1504_vm3, %v2550_v38, %v2674_v0  ;;  %v3070_v38 = vld [vmem:[#allocation15_spill] sm:$0xff]  ;;  %v3089_v0 = vmov 0.0  }
 0x4ec   :  { %1172 = vmatpush1.msra.mxu0 %v2552_v39  ;;  %1243 = vmatpush1.msra.mxu1 %v2555_v40 }
 0x4ed   :  { %1173 = vmatprep.subr.mxu0 %v2558_v41  ;;  %1244 = vmatprep.subr.mxu1 %v2561_v42 }
 0x4ee   :  { %1174 = vmatpush1.msra.mxu0 %v2564_v43  ;;  %1245 = vmatpush1.msra.mxu1 %v2567_v6 }
 0x4ef   :  { %1175 = vmatprep.subr.mxu0 %v2570_v45  ;;  %1246 = vmatprep.subr.mxu1 %v2573_v60 }
 0x4f0   :  { %1176 = vmatpush1.msra.mxu0 %v2576_v63  ;;  %1247 = vmatpush1.msra.mxu1 %v2579_v58 }
 0x4f1   :  { %1177 = vmatprep.subr.mxu0 %v2582_v52  ;;  %1248 = vmatprep.subr.mxu1 %v2585_v50 }
 0x4f2   :  { %1178 = vmatpush1.msra.mxu0 %v2588_v51  ;;  %1249 = vmatpush1.msra.mxu1 %v2591_v1 }
 0x4f3   :  { %1179 = vmatprep.subr.mxu0 %v2594_v62  ;;  %1250 = vmatprep.subr.mxu1 %v2597_v57 }
 0x4f4   :  { %1180 = vmatpush1.msra.mxu0 %v2600_v46  ;;  %1251 = vmatpush1.msra.mxu1 %v2603_v49 }
 0x4f5   :  { %1181 = vmatprep.subr.mxu0 %v3070_v38  ;;  %1252 = vmatprep.subr.mxu1 %v3071_v55 }
 0x4f6   :  { %1182 = vmatpush1.msra.mxu0 %v3072_v54  ;;  %1253 = vmatpush1.msra.mxu1 %v3073_v15 }
 0x4f7   :  { %1183 = vmatprep.subr.mxu0 %v3074_v24  ;;  %1254 = vmatprep.subr.mxu1 %v3075_v25 }
 0x4f8   :  { %1184 = vmatpush1.msra.mxu0 %v3076_v27  ;;  %1255 = vmatpush1.msra.mxu1 %v3077_v16 }
 0x4f9   :  { %1185 = vmatprep.subr.mxu0 %v3078_v18  ;;  %1256 = vmatprep.subr.mxu1 %v2712_v20  ;;  %v986_v18 = vld [vmem:[#allocation2 + $0xb8] sm:$0xff] }
 0x4fa   :  { %1186 = vmatpush1.msra.mxu0 %v3080_v21  ;;  %1257 = vmatpush1.msra.mxu1 %v2716_v8 }
 0x4fb   :  { %1187 = vmatprep.subr.mxu0 %v2719_v22  ;;  %1258 = vmatprep.subr.mxu1 %v2722_v19  ;;  %v2741_v19 = vld [vmem:[#allocation5 + $0x10] sm:$0xff] }
 0x4fc   :  { %1188 = vmatpush1.msra.mxu0 %v2725_v23  ;;  %1259 = vmatpush1.msra.mxu1 %v2728_v26  ;;  %3090 = vst [vmem:[#allocation38_spill] sm:$0xff] %v2741_v19  ;;  %v3091_v26 = vld [vmem:[#allocation13_spill] sm:$0xff]  ;;  %v3092_v23 = vld [vmem:[#allocation14_spill] sm:$0xff] }
 0x4fd   :  { %1189 = vmatprep.subr.mxu0 %v2731_v5  ;;  %1260 = vmatprep.subr.mxu1 %v2734_v28  ;;  %v983_v5 = vld [vmem:[#allocation2 + $0xa0] sm:$0xff]  ;;  %v984_v28 = vld [vmem:[#allocation2 + $0xa8] sm:$0xff] }
 0x4fe   :  { %1190 = vmatpush1.msra.mxu0 %v2737_v29  ;;  %1223 = vmatprep.mubr.f32.mxu0 %v3089_v0 }
 0x4ff   :  { %1261 = vmatpush1.msra.mxu1 %v2741_v19  ;;  %1294 = vmatprep.mubr.f32.mxu1 %v3089_v0  ;;  %v985_v19 = vld [vmem:[#allocation2 + $0xb0] sm:$0xff] }
 0x500   :  { %1331 = vmatprep.subr.mxu0 %v3091_v26  ;;  %1402 = vmatprep.subr.mxu1 %v3092_v23 }
 0x59f   :  { %v1053_v22 = vpop.f32.mrf.mxu0  ;;  %v1124_v8 = vpop.f32.mrf.mxu1 }
 0x5a0   :  { %v1129_v21 = vadd.f32 %v1053_v22, %v983_v5  ;;  %v1131_v25 = vadd.f32 %v1124_v8, %v985_v19 }
 0x5a1   :  { %v1055_v20 = vpop.f32.mrf.mxu0  ;;  %v1126_v29 = vpop.f32.mrf.mxu1 }
 0x5a2   :  { %1746 = vtanh.f32 %v1129_v21  ;;  %v1130_v16 = vadd.f32 %v1055_v20, %v984_v28  ;;  %v1132_v27 = vadd.f32 %v1126_v29, %v986_v18 }
 0x5a4   :  { %1748 = vtanh.f32 %v1130_v16 }
 0x5a5   :  { %1750 = vtanh.f32 %v1132_v27 }
 0x5a6   :  { %1752 = vtanh.f32 %v1131_v25 }
 0x5af   :  { %v1747_v0 = vpop.eup %1746 }
 0x5b0   :  { %v1137_v24 = vmul.f32 0.5, %v1747_v0 }
 0x5b1   :  { %v1749_v26 = vpop.eup %1748 }
 0x5b2   :  { %v1138_v15 = vadd.f32 0.5, %v1137_v24  ;;  %v1139_v23 = vmul.f32 0.5, %v1749_v26  ;;  %v1751_v55 = vpop.eup %1750 }
 0x5b3   :  { %v1753_v16 = vpop.eup %1752 }
 0x5b4   :  { %v1140_v54 = vadd.f32 0.5, %v1139_v23  ;;  %v1144_v5 = vmul.f32 %v1751_v55, %v1138_v15  ;;  %v1141_v18 = vmul.f32 0.5, %v1753_v16 }
 0x5b6   :  { %v1143_v22 = vmul.f32 %v1140_v54, %v2651_v61  ;;  %v1142_v27 = vadd.f32 0.5, %v1141_v18 }
 0x5b8   :  { %v2748_v38 = vadd.f32 %v1144_v5, %v1143_v22 }
 0x5ba   :  { %1754 = vtanh.f32 %v2748_v38 }
 0x5c7   :  { %v1755_v20 = vpop.eup %1754 }
 0x5c8   :  { %v1147_v21 = vmul.f32 %v1755_v20, %v1142_v27  ;;  %v1538_v20 = vld [vmem:[#allocation7 + $0x78] sm:$0xff] }
 0x5ca   :  { %v1148_v8 = vrot.slane %v1147_v21, 4  ;;  %1224 = vmatmul.mubr.f32.vlgmr.msra.gmra.mxu0 %v1147_v21  ;;  %1295 = vmatmul.mubr.f32.vlgmr.msra.gmra.mxu1 %v1147_v21 }
 0x5cb   :  { %1332 = vmatpush1.msra.mxu0 %v2473_v47  ;;  %1403 = vmatpush1.msra.mxu1 %v2476_v56 }
 0x5cc   :  { %v1149_v0 = vmax.f32 %v1147_v21, %v1148_v8  ;;  %1333 = vmatprep.subr.mxu0 %v2479_v53  ;;  %1404 = vmatprep.subr.mxu1 %v2482_v59  ;;  %v1537_v21 = vld [vmem:[#allocation7 + $0x70] sm:$0xff]  ;;  %v1536_v8 = vld [vmem:[#allocation7 + $0x68] sm:$0xff] }
 0x5cd   :  { %1334 = vmatpush1.msra.mxu0 %v2485_v4  ;;  %1405 = vmatpush1.msra.mxu1 %v2488_v48  ;;  %v3093_v4 = vld [vmem:[#allocation15_spill] sm:$0xff]  ;;  %v3094_v48 = vld [vmem:[#allocation18_spill] sm:$0xff] }
 0x5ce   :  { %v1150_v61 = vrot.slane %v1149_v0, 2  ;;  %1335 = vmatprep.subr.mxu0 %v2491_v44  ;;  %1406 = vmatprep.subr.mxu1 %v2494_v2  ;;  %v3095_v44 = vld [vmem:[#allocation17_spill] sm:$0xff]  ;;  %v3096_v2 = vld [vmem:[#allocation20_spill] sm:$0xff] }
 0x5cf   :  { %1336 = vmatpush1.msra.mxu0 %v2497_v3  ;;  %1407 = vmatpush1.msra.mxu1 %v2500_v7  ;;  %v3097_v3 = vld [vmem:[#allocation19_spill] sm:$0xff]  ;;  %v3098_v7 = vld [vmem:[#allocation22_spill] sm:$0xff] }
 0x5d0   :  { %1337 = vmatprep.subr.mxu0 %v2503_v9  ;;  %1408 = vmatprep.subr.mxu1 %v2506_v10  ;;  %v1151_v47 = vmax.f32 %v1149_v0, %v1150_v61  ;;  %v3099_v9 = vld [vmem:[#allocation21_spill] sm:$0xff]  ;;  %v3100_v10 = vld [vmem:[#allocation24_spill] sm:$0xff]  ;;  %v1535_v0 = vld [vmem:[#allocation7 + $0x60] sm:$0xff] }
 0x5d1   :  { %1338 = vmatpush1.msra.mxu0 %v2509_v11  ;;  %1409 = vmatpush1.msra.mxu1 %v2512_v12  ;;  %v3101_v11 = vld [vmem:[#allocation23_spill] sm:$0xff]  ;;  %v3102_v12 = vld [vmem:[#allocation28_spill] sm:$0xff]  ;;  %v1534_v61 = vld [vmem:[#allocation7 + $0x58] sm:$0xff] }
 0x5d2   :  { %1339 = vmatprep.subr.mxu0 %v2515_v13  ;;  %1410 = vmatprep.subr.mxu1 %v2518_v14  ;;  %v1152_v56 = vrot.slane %v1151_v47, 1  ;;  %v3103_v13 = vld [vmem:[#allocation26_spill] sm:$0xff]  ;;  %v3104_v14 = vld [vmem:[#allocation27_spill] sm:$0xff] }
 0x5d3   :  { %1340 = vmatpush1.msra.mxu0 %v2521_v17  ;;  %1411 = vmatpush1.msra.mxu1 %v2524_v30  ;;  %v3105_v17 = vld [vmem:[#allocation30_spill] sm:$0xff]  ;;  %v3106_v30 = vld [vmem:[#allocation29_spill] sm:$0xff] }
 0x5d4   :  { %1341 = vmatprep.subr.mxu0 %v2527_v31  ;;  %1412 = vmatprep.subr.mxu1 %v2530_v32  ;;  %v2771_v53 = vmax.f32 %v1151_v47, %v1152_v56  ;;  %v3107_v31 = vld [vmem:[#allocation32_spill] sm:$0xff]  ;;  %v3108_v32 = vld [vmem:[#allocation31_spill] sm:$0xff]  ;;  %v1533_v47 = vld [vmem:[#allocation7 + $0x50] sm:$0xff] }
 0x5d5   :  { %1342 = vmatpush1.msra.mxu0 %v2535_v34  ;;  %1413 = vmatpush1.msra.mxu1 %v2538_v35  ;;  %v3109_v34 = vld [vmem:[#allocation33_spill] sm:$0xff]  ;;  %v3110_v35 = vld [vmem:[#allocation36_spill] sm:$0xff] }
 0x5d6   :  { %1343 = vmatprep.subr.mxu0 %v2541_v36  ;;  %1414 = vmatprep.subr.mxu1 %v2544_v37  ;;  %v2780_v59 = vsel %vm1506_vm4, %v2683_v33, %v2771_v53  ;;  %v3111_v36 = vld [vmem:[#allocation37_spill] sm:$0xff]  ;;  %v3112_v37 = vmov 0.0   ;;  %v1532_v56 = vld [vmem:[#allocation7 + $0x48] sm:$0xff] }
 0x5d7   :  { %1344 = vmatpush1.msra.mxu0 %v2552_v39  ;;  %1415 = vmatpush1.msra.mxu1 %v2555_v40  ;;  %v3113_v39 = vld [vmem:[#allocation38_spill] sm:$0xff]  ;;  %v1155_v40 = vld [vmem:[#allocation2 + $0xc0] sm:$0xff] }
 0x5d8   :  { %1345 = vmatprep.subr.mxu0 %v2558_v41  ;;  %1416 = vmatprep.subr.mxu1 %v2561_v42 }
 0x5d9   :  { %1346 = vmatpush1.msra.mxu0 %v2564_v43  ;;  %1417 = vmatpush1.msra.mxu1 %v2567_v6  ;;  %v1156_v43 = vld [vmem:[#allocation2 + $0xc8] sm:$0xff] }
 0x5da   :  { %1347 = vmatprep.subr.mxu0 %v2570_v45  ;;  %1418 = vmatprep.subr.mxu1 %v2573_v60  ;;  %v1158_v60 = vld [vmem:[#allocation2 + $0xd8] sm:$0xff] }
 0x5db   :  { %1348 = vmatpush1.msra.mxu0 %v2576_v63  ;;  %1419 = vmatpush1.msra.mxu1 %v2579_v58 }
 0x5dc   :  { %1349 = vmatprep.subr.mxu0 %v2582_v52  ;;  %1420 = vmatprep.subr.mxu1 %v2585_v50  ;;  %v1157_v50 = vld [vmem:[#allocation2 + $0xd0] sm:$0xff] }
 0x5dd   :  { %1350 = vmatpush1.msra.mxu0 %v2588_v51  ;;  %1421 = vmatpush1.msra.mxu1 %v2591_v1 }
 0x5de   :  { %1351 = vmatprep.subr.mxu0 %v2594_v62  ;;  %1422 = vmatprep.subr.mxu1 %v2597_v57 }
 0x5df   :  { %1352 = vmatpush1.msra.mxu0 %v2600_v46  ;;  %1423 = vmatpush1.msra.mxu1 %v2603_v49 }
 0x5e0   :  { %1353 = vmatprep.subr.mxu0 %v3093_v4  ;;  %1424 = vmatprep.subr.mxu1 %v3094_v48  ;;  %v1530_v4 = vld [vmem:[#allocation7 + $0x38] sm:$0xff]  ;;  %v1529_v48 = vld [vmem:[#allocation7 + $0x30] sm:$0xff] }
 0x5e1   :  { %1354 = vmatpush1.msra.mxu0 %v3095_v44  ;;  %1425 = vmatpush1.msra.mxu1 %v3096_v2  ;;  %v1528_v44 = vld [vmem:[#allocation7 + $0x28] sm:$0xff]  ;;  %v1527_v2 = vld [vmem:[#allocation7 + $0x20] sm:$0xff] }
 0x5e2   :  { %1355 = vmatprep.subr.mxu0 %v3097_v3  ;;  %1426 = vmatprep.subr.mxu1 %v3098_v7  ;;  %v1526_v3 = vld [vmem:[#allocation7 + $0x18] sm:$0xff]  ;;  %v1525_v7 = vld [vmem:[#allocation7 + $0x10] sm:$0xff] }
 0x5e3   :  { %1356 = vmatpush1.msra.mxu0 %v3099_v9  ;;  %1427 = vmatpush1.msra.mxu1 %v3100_v10  ;;  %v1524_v9 = vld [vmem:[#allocation7 + $0x8] sm:$0xff]  ;;  %v1523_v10 = vld [vmem:[#allocation7] sm:$0xff] }
 0x5e4   :  { %1357 = vmatprep.subr.mxu0 %v3101_v11  ;;  %1428 = vmatprep.subr.mxu1 %v3102_v12  ;;  %v1327_v11 = vld [vmem:[#allocation2 + $0xe0] sm:$0xff] }
 0x5e5   :  { %1358 = vmatpush1.msra.mxu0 %v3103_v13  ;;  %1429 = vmatpush1.msra.mxu1 %v3104_v14  ;;  %v1328_v14 = vld [vmem:[#allocation2 + $0xe8] sm:$0xff] }
 0x5e6   :  { %1359 = vmatprep.subr.mxu0 %v3105_v17  ;;  %1430 = vmatprep.subr.mxu1 %v3106_v30 }
 0x5e7   :  { %1360 = vmatpush1.msra.mxu0 %v3107_v31  ;;  %1431 = vmatpush1.msra.mxu1 %v3108_v32  ;;  %v1330_v31 = vld [vmem:[#allocation2 + $0xf8] sm:$0xff] }
 0x5e8   :  { %1361 = vmatprep.subr.mxu0 %v3109_v34  ;;  %1432 = vmatprep.subr.mxu1 %v3110_v35 }
 0x5e9   :  { %1362 = vmatpush1.msra.mxu0 %v3111_v36  ;;  %1395 = vmatprep.mubr.f32.mxu0 %v3112_v37  ;;  %v1329_v36 = vld [vmem:[#allocation2 + $0xf0] sm:$0xff] }
 0x5ea   :  { %1433 = vmatpush1.msra.mxu1 %v3113_v39  ;;  %1466 = vmatprep.mubr.f32.mxu1 %v3112_v37 }
 0x5eb   :  { %1651 = vmatprep.subr.mxu0 %v3112_v37 }
 0x68a   :  { %v1225_v41 = vpop.f32.mrf.mxu0  ;;  %v1296_v42 = vpop.f32.mrf.mxu1 }
 0x68b   :  { %v1301_v6 = vadd.f32 %v1225_v41, %v1155_v40  ;;  %v1303_v51 = vadd.f32 %v1296_v42, %v1157_v50 }
 0x68c   :  { %v1227_v45 = vpop.f32.mrf.mxu0  ;;  %v1298_v63 = vpop.f32.mrf.mxu1 }
 0x68d   :  { %1756 = vtanh.f32 %v1301_v6  ;;  %v1302_v58 = vadd.f32 %v1227_v45, %v1156_v43  ;;  %v1304_v52 = vadd.f32 %v1298_v63, %v1158_v60 }
 0x68f   :  { %1758 = vtanh.f32 %v1302_v58 }
 0x690   :  { %1760 = vtanh.f32 %v1304_v52 }
 0x691   :  { %1762 = vtanh.f32 %v1303_v51 }
 0x69a   :  { %v1757_v1 = vpop.eup %1756 }
 0x69b   :  { %v1309_v62 = vmul.f32 0.5, %v1757_v1 }
 0x69c   :  { %v1759_v57 = vpop.eup %1758 }
 0x69d   :  { %v1310_v46 = vadd.f32 0.5, %v1309_v62  ;;  %v1311_v49 = vmul.f32 0.5, %v1759_v57  ;;  %v1761_v55 = vpop.eup %1760 }
 0x69e   :  { %v1763_v25 = vpop.eup %1762 }
 0x69f   :  { %v1312_v33 = vadd.f32 0.5, %v1311_v49  ;;  %v1316_v15 = vmul.f32 %v1761_v55, %v1310_v46  ;;  %v1313_v19 = vmul.f32 0.5, %v1763_v25 }
 0x6a1   :  { %v1315_v54 = vmul.f32 %v1312_v33, %v2748_v38  ;;  %v1314_v28 = vadd.f32 0.5, %v1313_v19 }
 0x6a3   :  { %v2824_v24 = vadd.f32 %v1316_v15, %v1315_v54  ;;  %v1519_v54 = vlaneseq }
 0x6a5   :  { %1764 = vtanh.f32 %v2824_v24  ;;  %v1520_v19 = vand.u32 127, %v1519_v54 }
 0x6a7   :  { %vm1521_vm8 = vcmp.lt.s32.totalorder %v1520_v19, 64 }
 0x6b2   :  { %v1765_v29 = vpop.eup %1764 }
 0x6b3   :  { %v1319_v26 = vmul.f32 %v1765_v29, %v1314_v28  ;;  %v3114_v28 = vld [vmem:[#allocation25_spill] sm:$0xff] }
 0x6b5   :  { %v1320_v23 = vrot.slane %v1319_v26, 4  ;;  %1396 = vmatmul.mubr.f32.vlgmr.msra.gmra.mxu0 %v1319_v26  ;;  %1467 = vmatmul.mubr.f32.vlgmr.msra.gmra.mxu1 %v1319_v26 }
 0x6b6   :  { %1652 = vmatpush3.msra.mxu0 %v1538_v20  ;;  %1683 = vmatprep.mubr.msk.f32.mxu0 %vm1934_vm6, %v3112_v37  ;;  %v3118_v20 = vld [vmem:[#allocation34_spill] sm:$0xff] }
 0x6b7   :  { %v1321_v22 = vmax.f32 %v1319_v26, %v1320_v23  ;;  %1653 = vmatprep.subr.mxu0 %v3112_v37  ;;  %v3115_v26 = vld [vmem:[#allocation16_spill] sm:$0xff] }
 0x6b8   :  { %1654 = vmatpush3.msra.mxu0 %v1537_v21 }
 0x6b9   :  { %v1322_v5 = vrot.slane %v1321_v22, 2  ;;  %1655 = vmatprep.subr.mxu0 %v3112_v37 }
 0x6ba   :  { %1656 = vmatpush3.msra.mxu0 %v1536_v8 }
 0x6bb   :  { %v1323_v16 = vmax.f32 %v1321_v22, %v1322_v5  ;;  %1657 = vmatprep.subr.mxu0 %v3112_v37  ;;  %v3116_v22 = vld [vmem:[#allocation12_spill] sm:$0xff] }
 0x6bc   :  { %1658 = vmatpush3.msra.mxu0 %v1535_v0 }
 0x6bd   :  { %v1324_v18 = vrot.slane %v1323_v16, 1  ;;  %1659 = vmatprep.subr.mxu0 %v3112_v37 }
 0x6be   :  { %1660 = vmatpush3.msra.mxu0 %v1534_v61 }
 0x6bf   :  { %v2827_v27 = vmax.f32 %v1323_v16, %v1324_v18  ;;  %1661 = vmatprep.subr.mxu0 %v3112_v37  ;;  %v3117_v16 = vld [vmem:[#allocation35_spill] sm:$0xff] }
 0x6c0   :  { %1662 = vmatpush3.msra.mxu0 %v1533_v47 }
 0x6c1   :  { %v2832_v38 = vsel %vm1508_vm5, %v2780_v59, %v2827_v27  ;;  %1663 = vmatprep.subr.mxu0 %v3112_v37  ;;  %v1531_v59 = vld [vmem:[#allocation7 + $0x40] sm:$0xff] }
 0x6c2   :  { %1664 = vmatpush3.msra.mxu0 %v1532_v56 }
 0x6c3   :  { %1665 = vmatprep.subr.mxu0 %v3112_v37 }
 0x6c4   :  { %1666 = vmatpush3.msra.mxu0 %v1531_v59 }
 0x6c5   :  { %1667 = vmatprep.subr.mxu0 %v3112_v37 }
 0x6c6   :  { %1668 = vmatpush3.msra.mxu0 %v1530_v4 }
 0x6c7   :  { %1669 = vmatprep.subr.mxu0 %v3112_v37 }
 0x6c8   :  { %1670 = vmatpush3.msra.mxu0 %v1529_v48 }
 0x6c9   :  { %1671 = vmatprep.subr.mxu0 %v3112_v37 }
 0x6ca   :  { %1672 = vmatpush3.msra.mxu0 %v1528_v44 }
 0x6cb   :  { %1673 = vmatprep.subr.mxu0 %v3112_v37 }
 0x6cc   :  { %1674 = vmatpush3.msra.mxu0 %v1527_v2 }
 0x6cd   :  { %1675 = vmatprep.subr.mxu0 %v3112_v37 }
 0x6ce   :  { %1676 = vmatpush3.msra.mxu0 %v1526_v3 }
 0x6cf   :  { %1677 = vmatprep.subr.mxu0 %v3112_v37 }
 0x6d0   :  { %1678 = vmatpush3.msra.mxu0 %v1525_v7 }
 0x6d1   :  { %1679 = vmatprep.subr.mxu0 %v3112_v37 }
 0x6d2   :  { %1680 = vmatpush3.msra.mxu0 %v1524_v9 }
 0x6d3   :  { %1681 = vmatprep.subr.mxu0 %v3112_v37 }
 0x6d4   :  { %1682 = vmatpush3.msra.mxu0 %v1523_v10 }
 0x775   :  { %v1397_v12 = vpop.f32.mrf.mxu0  ;;  %v1468_v13 = vpop.f32.mrf.mxu1 }
 0x776   :  { %v1473_v17 = vadd.f32 %v1397_v12, %v1327_v11  ;;  %v1475_v39 = vadd.f32 %v1468_v13, %v1329_v36 }
 0x777   :  { %v1399_v30 = vpop.f32.mrf.mxu0  ;;  %v1470_v32 = vpop.f32.mrf.mxu1 }
 0x778   :  { %1766 = vtanh.f32 %v1473_v17  ;;  %v1474_v34 = vadd.f32 %v1399_v30, %v1328_v14  ;;  %v1476_v35 = vadd.f32 %v1470_v32, %v1330_v31 }
 0x77a   :  { %1768 = vtanh.f32 %v1474_v34 }
 0x77b   :  { %1770 = vtanh.f32 %v1476_v35 }
 0x77c   :  { %1772 = vtanh.f32 %v1475_v39 }
 0x785   :  { %v1767_v40 = vpop.eup %1766 }
 0x786   :  { %v1481_v41 = vmul.f32 0.5, %v1767_v40 }
 0x787   :  { %v1769_v42 = vpop.eup %1768 }
 0x788   :  { %v1482_v37 = vadd.f32 0.5, %v1481_v41  ;;  %v1483_v43 = vmul.f32 0.5, %v1769_v42  ;;  %v1771_v45 = vpop.eup %1770 }
 0x789   :  { %v1773_v52 = vpop.eup %1772 }
 0x78a   :  { %v1484_v6 = vadd.f32 0.5, %v1483_v43  ;;  %v1488_v63 = vmul.f32 %v1771_v45, %v1482_v37  ;;  %v1485_v50 = vmul.f32 0.5, %v1773_v52 }
 0x78c   :  { %v1487_v60 = vmul.f32 %v1484_v6, %v2824_v24  ;;  %v1486_v51 = vadd.f32 0.5, %v1485_v50 }
 0x78e   :  { %v1489_v58 = vadd.f32 %v1488_v63, %v1487_v60 }
 0x790   :  { %1774 = vtanh.f32 %v1489_v58 }
 0x79d   :  { %v1775_v1 = vpop.eup %1774 }
 0x79e   :  { %v1491_v62 = vmul.f32 %v1775_v1, %v1486_v51 }
 0x7a0   :  { %v1492_v57 = vrot.slane %v1491_v62, 4 }
 0x7a2   :  { %v1493_v46 = vmax.f32 %v1491_v62, %v1492_v57 }
 0x7a4   :  { %v1494_v49 = vrot.slane %v1493_v46, 2 }
 0x7a6   :  { %v1495_v33 = vmax.f32 %v1493_v46, %v1494_v49 }
 0x7a8   :  { %v1496_v55 = vrot.slane %v1495_v33, 1 }
 0x7aa   :  { %v1497_v15 = vmax.f32 %v1495_v33, %v1496_v55 }
 0x7ac   :  { %v1512_v25 = vsel %vm1498_vm0, %v1497_v15, %v2827_v27  ;;  %v1511_v27 = vsel %vm1510_vm7, %v2832_v38, %v1497_v15 }
 0x7ad   :  { %v1513_v24 = vsel %vm1500_vm1, %v1512_v25, %v2771_v53  ;;  %v1633_v53 = vld [vmem:[%s2874_s3] ss:$0 sm:$0xff] }
 0x7ae   :  { %v1514_v29 = vsel %vm1502_vm2, %v1513_v24, %v3114_v28 }
 0x7af   :  { %v1515_v23 = vsel %vm1504_vm3, %v1514_v29, %v3115_v26 }
 0x7b0   :  { %v1516_v5 = vsel %vm1506_vm4, %v1515_v23, %v3116_v22 }
 0x7b1   :  { %v1517_v18 = vsel %vm1508_vm5, %v1516_v5, %v3117_v16 }
 0x7b2   :  { %v1518_v21 = vsel %vm1510_vm7, %v1517_v18, %v3118_v20 }
 0x7b3   :  { %v1522_v8 = vsel %vm1521_vm8, %v1511_v27, %v1518_v21 }
 0x7b4   :  { %1684 = vmatmul.mubr.f32.vlgmr.msra.gmra.mxu0 %v1522_v8 }
 0x874   :  { %v1612_v0 = vpop.f32.mrf.mxu0 }
 0x875   :  { %v1613_v61 = vadd.f32 %v1633_v53, %v1612_v0 }
 0x876   :  { %v1685_v47 = vpop.f32.mrf.mxu0 }
 0x877   :  { %1616 = vst [vmem:[#allocation8] sm:$0xff] %v1613_v61 }
 0x878   :  { %1911 = shalt.err (!%p1908_p5)
}
 0x879   :  { %1626 = dma.vmem_to_hbm [thread:$0]  %s1624_s8, 128, %s2875_s4, [#allocation4]  }
 0x87a   :  { %1924 = dma.done.wait [#allocation4], 128  }
 0x87b   :  { %1925 = vsyncadd [#allocation4], 4294967168 }
 0x87c   :  { %1630 = vsyncpa [#allocation3], 1 }
 0x87d   :  { %1631 = vsyncpa [#allocation6], 1 }
 0x87e   :  { %1632 = vsyncpa [#allocation4], 1 }

</bundles_post_ra>
